<compile_context>
chip_gen: v6e
topology: v6e:2x2x1
jax: 0.10.0
libtpu: 0.0.40
codegen_flags: <defaults>
</compile_context>

<pallas_src>
import functools
import math

import jax
import jax.numpy as jnp
from jax import lax
from jax.experimental import pallas as pl
from jax.experimental.pallas import tpu as pltpu


MXU_DTYPE = jnp.bfloat16     # MXU operand dtype (jnp.float32 for exact-f32 convs)
OUT_DTYPE = jnp.bfloat16     # kernel writeback dtype (halves output HBM traffic)
LRELU_SLOPE = 0.2


def _round_up(v, m):
    return ((v + m - 1) // m) * m


# ---------------------------------------------------------------------------
# Fused conv-stack kernel: the entire encoder+decoder per row block, activations
# resident in VMEM / vregs for all 13 layers.
# ---------------------------------------------------------------------------
def _fused_conv_stack_kernel(x_ref, w_ref, o_ref, xpad_ref, *,
                             plan, cpad, c_in, rows, seq_len, neg_slope, mxu_dtype):
    # ---- widen the raw (rows, C) input to a lane-dense (rows, CPAD) f32 slab ----
    # (done in-kernel so the wrapper never pushes a padded f32 slab through HBM)
    xpad_ref[...] = jnp.zeros((rows, cpad), jnp.float32)
    xpad_ref[:, :c_in] = x_ref[...].astype(jnp.float32)
    x = xpad_ref[...]

    # ---- hoisted per-row / per-lane constants (reused by every layer) ----
    t = lax.broadcasted_iota(jnp.int32, (rows, cpad), 0) % seq_len
    m_prev = (t >= 1).astype(jnp.float32)              # x[t-1] exists in-sequence
    m_next = (t <= seq_len - 2).astype(jnp.float32)    # x[t+1] exists in-sequence
    lane = lax.broadcasted_iota(jnp.int32, (rows, cpad), 1)
    bias_one = (lane == cpad - 1).astype(jnp.float32)  # constant-1 "bias" channel

    res = None
    for li, (cin, _cout, lrelu, save_res, add_res) in enumerate(plan):
        if save_res:                        # ResBlock: stash input of its 1st conv
            res = x
        # Time-shifted copies, zeroed across sequence boundaries (mask-multiply, XLU roll).
        xm = m_prev * pltpu.roll(x, shift=1, axis=0)           # x[t-1]
        xp = m_next * pltpu.roll(x, shift=rows - 1, axis=0)    # x[t+1]
        # Pack the 3 conv taps along the K (input-channel lane) axis:
        #   lanes [0:cin)=x[t], [cin:2cin)=x[t-1], [2cin:3cin)=x[t+1], lane CPAD-1 = 1.0
        # (x is zero beyond lane cin, so the cyclic lane-rolls wrap only zeros.)
        x_cat = (x
                 + pltpu.roll(xm, shift=cin, axis=1)
                 + pltpu.roll(xp, shift=2 * cin, axis=1)
                 + bias_one)
        # One (rows, CPAD) x (CPAD, CPAD) MXU matmul per layer; bias folded into the
        # last weight row; bf16 operands, f32 accumulation / epilogue.
        out = jnp.dot(x_cat.astype(mxu_dtype), w_ref[li],
                      preferred_element_type=jnp.float32)
        if lrelu:
            out = jnp.maximum(out, neg_slope * out)    # LeakyReLU(0.2), slope < 1
        if add_res:                          # ResBlock: out += residual
            out = out + res
        x = out

    o_ref[...] = x.astype(o_ref.dtype)       # lane-dense 128-wide store (bf16)


def fused_conv_stack(x_raw, w_stack, plan, *, seq_len, rows_block, num_blocks,
                     cpad, neg_slope=LRELU_SLOPE, mxu_dtype=MXU_DTYPE,
                     out_dtype=OUT_DTYPE):
    rows, c_in = x_raw.shape
    L = w_stack.shape[0]
    kernel = functools.partial(
        _fused_conv_stack_kernel, plan=plan, cpad=cpad, c_in=c_in,
        rows=rows_block, seq_len=seq_len, neg_slope=neg_slope, mxu_dtype=mxu_dtype)
    return pl.pallas_call(
        kernel,
        out_shape=jax.ShapeDtypeStruct((rows, cpad), out_dtype),
        grid=(num_blocks,),
        in_specs=[
            # Raw, un-padded activations: block last dim == full array dim (C), so the
            # (8,128) rule is satisfied and no padded slab goes through HBM.
            pl.BlockSpec((rows_block, c_in), lambda i: (i, 0)),
            # Grid-invariant stacked weights (L, CPAD, CPAD) bf16 (~0.4 MiB here).
            # Default double-buffering of this operand is immaterial at CPAD=128;
            # use pipeline_mode=pl.Buffered(1) only if CPAD grows.
            pl.BlockSpec((L, cpad, cpad), lambda i: (0, 0, 0)),
        ],
        out_specs=pl.BlockSpec((rows_block, cpad), lambda i: (i, 0)),
        scratch_shapes=[pltpu.VMEM((rows_block, cpad), jnp.float32)],
        compiler_params=pltpu.CompilerParams(
            dimension_semantics=("parallel",),
            vmem_limit_bytes=48 * 1024 * 1024),   # well under v7x's 64 MiB physical
    )(x_raw, w_stack)


# ---------------------------------------------------------------------------
# Static layer plan mirroring VQEncoderV5 / VQDecoderV5 / ResBlock
# ---------------------------------------------------------------------------
def build_plan(args):
    """Flat per-conv plan for VQEncoderV5 followed by VQDecoderV5.
    Entry: (cin, cout, leaky_relu_after, save_residual_before, add_residual_after)."""
    plan = []

    # ---- VQEncoderV5: n_down x [Conv1d + LeakyReLU(0.2) + ResBlock] ----
    n_down = args.vae_layer
    channels = [args.vae_length] * n_down
    cin = args.vae_test_dim
    for i in range(n_down):
        cout = channels[i]
        plan.append((cin, cout, True, False, False))     # Conv1d + LeakyReLU
        plan.append((cout, cout, True, True, False))     # ResBlock conv1 (+LReLU)
        plan.append((cout, cout, False, False, True))    # ResBlock conv2 (+residual)
        cin = cout

    # ---- VQDecoderV5: [opt in-conv] + 2 ResBlocks + n_up x [Conv1d+LReLU] + out conv ----
    n_up = args.vae_layer
    channels = [args.vae_length] * n_up + [args.vae_test_dim]
    cin = args.vae_length
    if cin != channels[0]:
        plan.append((cin, channels[0], False, False, False))
        cin = channels[0]
    for _ in range(2):                                    # n_resblk = 2
        plan.append((cin, cin, True, True, False))
        plan.append((cin, cin, False, False, True))
    for i in range(n_up):
        plan.append((channels[i], channels[i + 1], True, False, False))
    plan.append((channels[-1], channels[-1], False, False, False))
    return tuple(plan)


def init_params(key, args):
    """Deterministic PyTorch-like init; packs every conv layer into one stacked,
    channel-padded, K-side tap-concatenated weight tensor with the bias folded into
    the last (constant-1) input lane."""
    plan = build_plan(args)
    max_cin = max(cin for cin, _c, *_ in plan)
    max_cout = max(cout for _c, cout, *_ in plan)
    # One lane-dense pad covering both K (= 3*Cin taps + 1 bias lane) and N (= Cout).
    cpad = _round_up(max(3 * max_cin + 1, max_cout), 128)

    keys = jax.random.split(key, len(plan))
    w_rows = []
    for (cin, cout, *_), k in zip(plan, keys):
        kw, kb = jax.random.split(k)
        bound = 1.0 / math.sqrt(cin * 3)                  # Conv1d fan-in uniform
        w = jax.random.uniform(kw, (3, cin, cout), jnp.float32, -bound, bound)
        b = jax.random.uniform(kb, (cout,), jnp.float32, -bound, bound)
        wp = jnp.zeros((cpad, cpad), jnp.float32)
        wp = wp.at[0:cin, :cout].set(w[1])                # center tap  * x[t]
        wp = wp.at[cin:2 * cin, :cout].set(w[0])          # left tap    * x[t-1]
        wp = wp.at[2 * cin:3 * cin, :cout].set(w[2])      # right tap   * x[t+1]
        wp = wp.at[cpad - 1, :cout].set(b)                # bias via constant-1 lane
        w_rows.append(wp)

    return {
        'plan': plan,
        'cpad': cpad,
        'c_out': args.vae_test_dim,
        'w': jnp.stack(w_rows).astype(MXU_DTYPE),         # (L, CPAD, CPAD)
    }


def _pick_blocking(batch, seq_len, target_rows=1024):
    """Rows per grid block: whole sequences only (roll/mask invariant), a multiple of
    16 sublanes (safe for f32 and bf16 tiling), <= target_rows (v7x VMEM budget), and
    >= 2 blocks whenever divisibility allows so both v7x TensorCores get work."""
    cands = [d for d in range(1, batch + 1)
             if batch % d == 0 and (d * seq_len) % 16 == 0]
    if not cands:
        return batch * seq_len, 1          # single block == full array dims (always legal)

    def score(d):
        rows = d * seq_len
        return (rows <= target_rows, batch // d >= 2, rows)

    d = max(cands, key=score)
    return d * seq_len, batch // d


def vae_conv_zero_forward(params, inputs):
    """VAEConvZero.forward: rec_pose = decoder(encoder(inputs)); inputs (B, T, C)."""
    B, T, C = inputs.shape
    x_raw = inputs.reshape(B * T, C).astype(jnp.float32)   # raw, un-padded rows
    rows_block, num_blocks = _pick_blocking(B, T)
    y = fused_conv_stack(x_raw, params['w'], params['plan'], seq_len=T,
                         rows_block=rows_block, num_blocks=num_blocks,
                         cpad=params['cpad'])
    rec_pose = (y[:, :params['c_out']]
                .astype(jnp.float32)
                .reshape(B, T, params['c_out']))
    return {'rec_pose': rec_pose}


class Args:
    vae_test_dim = 16          # pose / motion feature dim
    vae_length = 32            # latent channel dim
    vae_layer = 2              # n_down / n_up


if __name__ == "__main__":
    args = Args()
    key = jax.random.PRNGKey(0)
    k_params, k_x = jax.random.split(key)

    params = init_params(k_params, args)

    B, T = 2, 16
    x = jax.random.normal(k_x, (B, T, args.vae_test_dim), jnp.float32)

    fwd = jax.jit(functools.partial(vae_conv_zero_forward, params))
    out = fwd(x)
    jax.block_until_ready(out)

    assert out['rec_pose'].shape == (B, T, args.vae_test_dim)
    assert bool(jnp.all(jnp.isfinite(out['rec_pose'])))
    print("KERNEL_OK")
</pallas_src>

<mosaic_0001>
module attributes {stable_mosaic.version = 11 : i64} {
  func.func @_fused_conv_stack_kernel(%arg0: i32, %arg1: memref<16x16xf32, #tpu.memory_space<vmem>>, %arg2: memref<13x128x128xbf16, #tpu.memory_space<vmem>>, %arg3: memref<16x128xbf16, #tpu.memory_space<vmem>>, %arg4: memref<16x128xf32, #tpu.memory_space<vmem>>) attributes {dimension_semantics = [#tpu.dimension_semantics<parallel>], iteration_bounds = array<i64: 2>, scalar_prefetch = 0 : i64, scratch_operands = 1 : i64, tpu.core_type = #tpu.core_type<tc>, window_params = [{transform_indices = @transform_0, window_bounds = array<i64: 16, 16>}, {pipeline_mode = #tpu.pipeline_mode<synchronous>, transform_indices = @transform_1, window_bounds = array<i64: 13, 128, 128>}, {transform_indices = @transform_2, window_bounds = array<i64: 16, 128>}]} {
    %cst = arith.constant 0.000000e+00 : f32
    %0 = vector.broadcast %cst : f32 to vector<16x128xf32>
    %c0 = arith.constant 0 : index
    %c0_0 = arith.constant 0 : index
    %1 = vector.load %arg4[%c0, %c0_0] : memref<16x128xf32, #tpu.memory_space<vmem>>, vector<16x128xf32>
    tpu.vector_store %arg4[%c0, %c0_0], %0 {strides = array<i32>} : memref<16x128xf32, #tpu.memory_space<vmem>>, vector<16x128xf32>,
    %c0_1 = arith.constant 0 : index
    %c0_2 = arith.constant 0 : index
    %2 = vector.load %arg1[%c0_1, %c0_2] : memref<16x16xf32, #tpu.memory_space<vmem>>, vector<16x16xf32>
    %c0_3 = arith.constant 0 : index
    %c0_4 = arith.constant 0 : index
    %3 = vector.load %arg4[%c0_3, %c0_4] : memref<16x128xf32, #tpu.memory_space<vmem>>, vector<16x16xf32>
    tpu.vector_store %arg4[%c0_3, %c0_4], %2 {strides = array<i32>} : memref<16x128xf32, #tpu.memory_space<vmem>>, vector<16x16xf32>,
    %c0_5 = arith.constant 0 : index
    %c0_6 = arith.constant 0 : index
    %4 = vector.load %arg4[%c0_5, %c0_6] : memref<16x128xf32, #tpu.memory_space<vmem>>, vector<16x128xf32>
    %5 = tpu.iota {dimensions = array<i32: 0>} : vector<16x128xi32>
    %c16_i32 = arith.constant 16 : i32
    %c0_i32 = arith.constant 0 : i32
    %6 = arith.cmpi eq, %c16_i32, %c0_i32 : i32
    %c1_i32 = arith.constant 1 : i32
    %7 = arith.select %6, %c1_i32, %c16_i32 : i32
    %8 = vector.broadcast %7 : i32 to vector<16x128xi32>
    %9 = arith.remsi %5, %8 : vector<16x128xi32>
    %c0_i32_7 = arith.constant 0 : i32
    %10 = vector.broadcast %c0_i32_7 : i32 to vector<16x128xi32>
    %11 = arith.cmpi ne, %9, %10 : vector<16x128xi32>
    %c0_i32_8 = arith.constant 0 : i32
    %12 = vector.broadcast %c0_i32_8 : i32 to vector<16x128xi32>
    %13 = arith.cmpi slt, %9, %12 : vector<16x128xi32>
    %c0_i32_9 = arith.constant 0 : i32
    %14 = arith.cmpi slt, %7, %c0_i32_9 : i32
    %15 = vector.broadcast %14 : i1 to vector<16x128xi1>
    %16 = vector.broadcast %15 : vector<16x128xi1> to vector<16x128xi1>
    %17 = arith.xori %13, %16 : vector<16x128xi1>
    %18 = arith.andi %17, %11 : vector<16x128xi1>
    %19 = vector.broadcast %7 : i32 to vector<16x128xi32>
    %20 = arith.addi %9, %19 : vector<16x128xi32>
    %21 = arith.select %18, %20, %9 : vector<16x128xi1>, vector<16x128xi32>
    %c1_i32_10 = arith.constant 1 : i32
    %22 = vector.broadcast %c1_i32_10 : i32 to vector<16x128xi32>
    %23 = arith.cmpi sge, %21, %22 : vector<16x128xi32>
    %24 = arith.extui %23 : vector<16x128xi1> to vector<16x128xi32>
    %25 = arith.sitofp %24 : vector<16x128xi32> to vector<16x128xf32>
    %c14_i32 = arith.constant 14 : i32
    %26 = vector.broadcast %c14_i32 : i32 to vector<16x128xi32>
    %27 = arith.cmpi sle, %21, %26 : vector<16x128xi32>
    %28 = arith.extui %27 : vector<16x128xi1> to vector<16x128xi32>
    %29 = arith.sitofp %28 : vector<16x128xi32> to vector<16x128xf32>
    %30 = tpu.iota {dimensions = array<i32: 1>} : vector<16x128xi32>
    %c127_i32 = arith.constant 127 : i32
    %31 = vector.broadcast %c127_i32 : i32 to vector<16x128xi32>
    %32 = arith.cmpi eq, %30, %31 : vector<16x128xi32>
    %33 = arith.extui %32 : vector<16x128xi1> to vector<16x128xi32>
    %34 = arith.sitofp %33 : vector<16x128xi32> to vector<16x128xf32>
    %c1_i32_11 = arith.constant 1 : i32
    %35 = tpu.dynamic_rotate %4 by %c1_i32_11 dim 0 : vector<16x128xf32>, i32 -> vector<16x128xf32>
    %36 = arith.mulf %25, %35 : vector<16x128xf32>
    %c15_i32 = arith.constant 15 : i32
    %37 = tpu.dynamic_rotate %4 by %c15_i32 dim 0 : vector<16x128xf32>, i32 -> vector<16x128xf32>
    %38 = arith.mulf %29, %37 : vector<16x128xf32>
    %c16_i32_12 = arith.constant 16 : i32
    %39 = tpu.dynamic_rotate %36 by %c16_i32_12 dim 1 : vector<16x128xf32>, i32 -> vector<16x128xf32>
    %40 = arith.addf %4, %39 : vector<16x128xf32>
    %c32_i32 = arith.constant 32 : i32
    %41 = tpu.dynamic_rotate %38 by %c32_i32 dim 1 : vector<16x128xf32>, i32 -> vector<16x128xf32>
    %42 = arith.addf %40, %41 : vector<16x128xf32>
    %43 = arith.addf %42, %34 : vector<16x128xf32>
    %44 = arith.truncf %43 : vector<16x128xf32> to vector<16x128xbf16>
    %c0_13 = arith.constant 0 : index
    %c0_14 = arith.constant 0 : index
    %c0_15 = arith.constant 0 : index
    %45 = vector.load %arg2[%c0_13, %c0_14, %c0_15] : memref<13x128x128xbf16, #tpu.memory_space<vmem>>, vector<1x128x128xbf16>
    %46 = vector.shape_cast %45 : vector<1x128x128xbf16> to vector<128x128xbf16>
    %cst_16 = arith.constant dense<0.000000e+00> : vector<16x128xf32>
    %47 = tpu.matmul %44, %46, %cst_16 {dimension_numbers = #tpu.dot_dimension_numbers<[1], [0], [0], [1], [0, 0, 1, 1], [], []>} : vector<16x128xbf16>, vector<128x128xbf16>, vector<16x128xf32> -> vector<16x128xf32>
    %cst_17 = arith.constant 2.000000e-01 : f32
    %48 = vector.broadcast %cst_17 : f32 to vector<16x128xf32>
    %49 = arith.mulf %48, %47 : vector<16x128xf32>
    %50 = arith.maximumf %47, %49 : vector<16x128xf32>
    %c1_i32_18 = arith.constant 1 : i32
    %51 = tpu.dynamic_rotate %50 by %c1_i32_18 dim 0 : vector<16x128xf32>, i32 -> vector<16x128xf32>
    %52 = arith.mulf %25, %51 : vector<16x128xf32>
    %c15_i32_19 = arith.constant 15 : i32
    %53 = tpu.dynamic_rotate %50 by %c15_i32_19 dim 0 : vector<16x128xf32>, i32 -> vector<16x128xf32>
    %54 = arith.mulf %29, %53 : vector<16x128xf32>
    %c32_i32_20 = arith.constant 32 : i32
    %55 = tpu.dynamic_rotate %52 by %c32_i32_20 dim 1 : vector<16x128xf32>, i32 -> vector<16x128xf32>
    %56 = arith.addf %50, %55 : vector<16x128xf32>
    %c64_i32 = arith.constant 64 : i32
    %57 = tpu.dynamic_rotate %54 by %c64_i32 dim 1 : vector<16x128xf32>, i32 -> vector<16x128xf32>
    %58 = arith.addf %56, %57 : vector<16x128xf32>
    %59 = arith.addf %58, %34 : vector<16x128xf32>
    %60 = arith.truncf %59 : vector<16x128xf32> to vector<16x128xbf16>
    %c1 = arith.constant 1 : index
    %c0_21 = arith.constant 0 : index
    %c0_22 = arith.constant 0 : index
    %61 = vector.load %arg2[%c1, %c0_21, %c0_22] : memref<13x128x128xbf16, #tpu.memory_space<vmem>>, vector<1x128x128xbf16>
    %62 = vector.shape_cast %61 : vector<1x128x128xbf16> to vector<128x128xbf16>
    %cst_23 = arith.constant dense<0.000000e+00> : vector<16x128xf32>
    %63 = tpu.matmul %60, %62, %cst_23 {dimension_numbers = #tpu.dot_dimension_numbers<[1], [0], [0], [1], [0, 0, 1, 1], [], []>} : vector<16x128xbf16>, vector<128x128xbf16>, vector<16x128xf32> -> vector<16x128xf32>
    %cst_24 = arith.constant 2.000000e-01 : f32
    %64 = vector.broadcast %cst_24 : f32 to vector<16x128xf32>
    %65 = arith.mulf %64, %63 : vector<16x128xf32>
    %66 = arith.maximumf %63, %65 : vector<16x128xf32>
    %c1_i32_25 = arith.constant 1 : i32
    %67 = tpu.dynamic_rotate %66 by %c1_i32_25 dim 0 : vector<16x128xf32>, i32 -> vector<16x128xf32>
    %68 = arith.mulf %25, %67 : vector<16x128xf32>
    %c15_i32_26 = arith.constant 15 : i32
    %69 = tpu.dynamic_rotate %66 by %c15_i32_26 dim 0 : vector<16x128xf32>, i32 -> vector<16x128xf32>
    %70 = arith.mulf %29, %69 : vector<16x128xf32>
    %c32_i32_27 = arith.constant 32 : i32
    %71 = tpu.dynamic_rotate %68 by %c32_i32_27 dim 1 : vector<16x128xf32>, i32 -> vector<16x128xf32>
    %72 = arith.addf %66, %71 : vector<16x128xf32>
    %c64_i32_28 = arith.constant 64 : i32
    %73 = tpu.dynamic_rotate %70 by %c64_i32_28 dim 1 : vector<16x128xf32>, i32 -> vector<16x128xf32>
    %74 = arith.addf %72, %73 : vector<16x128xf32>
    %75 = arith.addf %74, %34 : vector<16x128xf32>
    %76 = arith.truncf %75 : vector<16x128xf32> to vector<16x128xbf16>
    %c2 = arith.constant 2 : index
    %c0_29 = arith.constant 0 : index
    %c0_30 = arith.constant 0 : index
    %77 = vector.load %arg2[%c2, %c0_29, %c0_30] : memref<13x128x128xbf16, #tpu.memory_space<vmem>>, vector<1x128x128xbf16>
    %78 = vector.shape_cast %77 : vector<1x128x128xbf16> to vector<128x128xbf16>
    %cst_31 = arith.constant dense<0.000000e+00> : vector<16x128xf32>
    %79 = tpu.matmul %76, %78, %cst_31 {dimension_numbers = #tpu.dot_dimension_numbers<[1], [0], [0], [1], [0, 0, 1, 1], [], []>} : vector<16x128xbf16>, vector<128x128xbf16>, vector<16x128xf32> -> vector<16x128xf32>
    %80 = arith.addf %79, %50 : vector<16x128xf32>
    %c1_i32_32 = arith.constant 1 : i32
    %81 = tpu.dynamic_rotate %80 by %c1_i32_32 dim 0 : vector<16x128xf32>, i32 -> vector<16x128xf32>
    %82 = arith.mulf %25, %81 : vector<16x128xf32>
    %c15_i32_33 = arith.constant 15 : i32
    %83 = tpu.dynamic_rotate %80 by %c15_i32_33 dim 0 : vector<16x128xf32>, i32 -> vector<16x128xf32>
    %84 = arith.mulf %29, %83 : vector<16x128xf32>
    %c32_i32_34 = arith.constant 32 : i32
    %85 = tpu.dynamic_rotate %82 by %c32_i32_34 dim 1 : vector<16x128xf32>, i32 -> vector<16x128xf32>
    %86 = arith.addf %80, %85 : vector<16x128xf32>
    %c64_i32_35 = arith.constant 64 : i32
    %87 = tpu.dynamic_rotate %84 by %c64_i32_35 dim 1 : vector<16x128xf32>, i32 -> vector<16x128xf32>
    %88 = arith.addf %86, %87 : vector<16x128xf32>
    %89 = arith.addf %88, %34 : vector<16x128xf32>
    %90 = arith.truncf %89 : vector<16x128xf32> to vector<16x128xbf16>
    %c3 = arith.constant 3 : index
    %c0_36 = arith.constant 0 : index
    %c0_37 = arith.constant 0 : index
    %91 = vector.load %arg2[%c3, %c0_36, %c0_37] : memref<13x128x128xbf16, #tpu.memory_space<vmem>>, vector<1x128x128xbf16>
    %92 = vector.shape_cast %91 : vector<1x128x128xbf16> to vector<128x128xbf16>
    %cst_38 = arith.constant dense<0.000000e+00> : vector<16x128xf32>
    %93 = tpu.matmul %90, %92, %cst_38 {dimension_numbers = #tpu.dot_dimension_numbers<[1], [0], [0], [1], [0, 0, 1, 1], [], []>} : vector<16x128xbf16>, vector<128x128xbf16>, vector<16x128xf32> -> vector<16x128xf32>
    %cst_39 = arith.constant 2.000000e-01 : f32
    %94 = vector.broadcast %cst_39 : f32 to vector<16x128xf32>
    %95 = arith.mulf %94, %93 : vector<16x128xf32>
    %96 = arith.maximumf %93, %95 : vector<16x128xf32>
    %c1_i32_40 = arith.constant 1 : i32
    %97 = tpu.dynamic_rotate %96 by %c1_i32_40 dim 0 : vector<16x128xf32>, i32 -> vector<16x128xf32>
    %98 = arith.mulf %25, %97 : vector<16x128xf32>
    %c15_i32_41 = arith.constant 15 : i32
    %99 = tpu.dynamic_rotate %96 by %c15_i32_41 dim 0 : vector<16x128xf32>, i32 -> vector<16x128xf32>
    %100 = arith.mulf %29, %99 : vector<16x128xf32>
    %c32_i32_42 = arith.constant 32 : i32
    %101 = tpu.dynamic_rotate %98 by %c32_i32_42 dim 1 : vector<16x128xf32>, i32 -> vector<16x128xf32>
    %102 = arith.addf %96, %101 : vector<16x128xf32>
    %c64_i32_43 = arith.constant 64 : i32
    %103 = tpu.dynamic_rotate %100 by %c64_i32_43 dim 1 : vector<16x128xf32>, i32 -> vector<16x128xf32>
    %104 = arith.addf %102, %103 : vector<16x128xf32>
    %105 = arith.addf %104, %34 : vector<16x128xf32>
    %106 = arith.truncf %105 : vector<16x128xf32> to vector<16x128xbf16>
    %c4 = arith.constant 4 : index
    %c0_44 = arith.constant 0 : index
    %c0_45 = arith.constant 0 : index
    %107 = vector.load %arg2[%c4, %c0_44, %c0_45] : memref<13x128x128xbf16, #tpu.memory_space<vmem>>, vector<1x128x128xbf16>
    %108 = vector.shape_cast %107 : vector<1x128x128xbf16> to vector<128x128xbf16>
    %cst_46 = arith.constant dense<0.000000e+00> : vector<16x128xf32>
    %109 = tpu.matmul %106, %108, %cst_46 {dimension_numbers = #tpu.dot_dimension_numbers<[1], [0], [0], [1], [0, 0, 1, 1], [], []>} : vector<16x128xbf16>, vector<128x128xbf16>, vector<16x128xf32> -> vector<16x128xf32>
    %cst_47 = arith.constant 2.000000e-01 : f32
    %110 = vector.broadcast %cst_47 : f32 to vector<16x128xf32>
    %111 = arith.mulf %110, %109 : vector<16x128xf32>
    %112 = arith.maximumf %109, %111 : vector<16x128xf32>
    %c1_i32_48 = arith.constant 1 : i32
    %113 = tpu.dynamic_rotate %112 by %c1_i32_48 dim 0 : vector<16x128xf32>, i32 -> vector<16x128xf32>
    %114 = arith.mulf %25, %113 : vector<16x128xf32>
    %c15_i32_49 = arith.constant 15 : i32
    %115 = tpu.dynamic_rotate %112 by %c15_i32_49 dim 0 : vector<16x128xf32>, i32 -> vector<16x128xf32>
    %116 = arith.mulf %29, %115 : vector<16x128xf32>
    %c32_i32_50 = arith.constant 32 : i32
    %117 = tpu.dynamic_rotate %114 by %c32_i32_50 dim 1 : vector<16x128xf32>, i32 -> vector<16x128xf32>
    %118 = arith.addf %112, %117 : vector<16x128xf32>
    %c64_i32_51 = arith.constant 64 : i32
    %119 = tpu.dynamic_rotate %116 by %c64_i32_51 dim 1 : vector<16x128xf32>, i32 -> vector<16x128xf32>
    %120 = arith.addf %118, %119 : vector<16x128xf32>
    %121 = arith.addf %120, %34 : vector<16x128xf32>
    %122 = arith.truncf %121 : vector<16x128xf32> to vector<16x128xbf16>
    %c5 = arith.constant 5 : index
    %c0_52 = arith.constant 0 : index
    %c0_53 = arith.constant 0 : index
    %123 = vector.load %arg2[%c5, %c0_52, %c0_53] : memref<13x128x128xbf16, #tpu.memory_space<vmem>>, vector<1x128x128xbf16>
    %124 = vector.shape_cast %123 : vector<1x128x128xbf16> to vector<128x128xbf16>
    %cst_54 = arith.constant dense<0.000000e+00> : vector<16x128xf32>
    %125 = tpu.matmul %122, %124, %cst_54 {dimension_numbers = #tpu.dot_dimension_numbers<[1], [0], [0], [1], [0, 0, 1, 1], [], []>} : vector<16x128xbf16>, vector<128x128xbf16>, vector<16x128xf32> -> vector<16x128xf32>
    %126 = arith.addf %125, %96 : vector<16x128xf32>
    %c1_i32_55 = arith.constant 1 : i32
    %127 = tpu.dynamic_rotate %126 by %c1_i32_55 dim 0 : vector<16x128xf32>, i32 -> vector<16x128xf32>
    %128 = arith.mulf %25, %127 : vector<16x128xf32>
    %c15_i32_56 = arith.constant 15 : i32
    %129 = tpu.dynamic_rotate %126 by %c15_i32_56 dim 0 : vector<16x128xf32>, i32 -> vector<16x128xf32>
    %130 = arith.mulf %29, %129 : vector<16x128xf32>
    %c32_i32_57 = arith.constant 32 : i32
    %131 = tpu.dynamic_rotate %128 by %c32_i32_57 dim 1 : vector<16x128xf32>, i32 -> vector<16x128xf32>
    %132 = arith.addf %126, %131 : vector<16x128xf32>
    %c64_i32_58 = arith.constant 64 : i32
    %133 = tpu.dynamic_rotate %130 by %c64_i32_58 dim 1 : vector<16x128xf32>, i32 -> vector<16x128xf32>
    %134 = arith.addf %132, %133 : vector<16x128xf32>
    %135 = arith.addf %134, %34 : vector<16x128xf32>
    %136 = arith.truncf %135 : vector<16x128xf32> to vector<16x128xbf16>
    %c6 = arith.constant 6 : index
    %c0_59 = arith.constant 0 : index
    %c0_60 = arith.constant 0 : index
    %137 = vector.load %arg2[%c6, %c0_59, %c0_60] : memref<13x128x128xbf16, #tpu.memory_space<vmem>>, vector<1x128x128xbf16>
    %138 = vector.shape_cast %137 : vector<1x128x128xbf16> to vector<128x128xbf16>
    %cst_61 = arith.constant dense<0.000000e+00> : vector<16x128xf32>
    %139 = tpu.matmul %136, %138, %cst_61 {dimension_numbers = #tpu.dot_dimension_numbers<[1], [0], [0], [1], [0, 0, 1, 1], [], []>} : vector<16x128xbf16>, vector<128x128xbf16>, vector<16x128xf32> -> vector<16x128xf32>
    %cst_62 = arith.constant 2.000000e-01 : f32
    %140 = vector.broadcast %cst_62 : f32 to vector<16x128xf32>
    %141 = arith.mulf %140, %139 : vector<16x128xf32>
    %142 = arith.maximumf %139, %141 : vector<16x128xf32>
    %c1_i32_63 = arith.constant 1 : i32
    %143 = tpu.dynamic_rotate %142 by %c1_i32_63 dim 0 : vector<16x128xf32>, i32 -> vector<16x128xf32>
    %144 = arith.mulf %25, %143 : vector<16x128xf32>
    %c15_i32_64 = arith.constant 15 : i32
    %145 = tpu.dynamic_rotate %142 by %c15_i32_64 dim 0 : vector<16x128xf32>, i32 -> vector<16x128xf32>
    %146 = arith.mulf %29, %145 : vector<16x128xf32>
    %c32_i32_65 = arith.constant 32 : i32
    %147 = tpu.dynamic_rotate %144 by %c32_i32_65 dim 1 : vector<16x128xf32>, i32 -> vector<16x128xf32>
    %148 = arith.addf %142, %147 : vector<16x128xf32>
    %c64_i32_66 = arith.constant 64 : i32
    %149 = tpu.dynamic_rotate %146 by %c64_i32_66 dim 1 : vector<16x128xf32>, i32 -> vector<16x128xf32>
    %150 = arith.addf %148, %149 : vector<16x128xf32>
    %151 = arith.addf %150, %34 : vector<16x128xf32>
    %152 = arith.truncf %151 : vector<16x128xf32> to vector<16x128xbf16>
    %c7 = arith.constant 7 : index
    %c0_67 = arith.constant 0 : index
    %c0_68 = arith.constant 0 : index
    %153 = vector.load %arg2[%c7, %c0_67, %c0_68] : memref<13x128x128xbf16, #tpu.memory_space<vmem>>, vector<1x128x128xbf16>
    %154 = vector.shape_cast %153 : vector<1x128x128xbf16> to vector<128x128xbf16>
    %cst_69 = arith.constant dense<0.000000e+00> : vector<16x128xf32>
    %155 = tpu.matmul %152, %154, %cst_69 {dimension_numbers = #tpu.dot_dimension_numbers<[1], [0], [0], [1], [0, 0, 1, 1], [], []>} : vector<16x128xbf16>, vector<128x128xbf16>, vector<16x128xf32> -> vector<16x128xf32>
    %156 = arith.addf %155, %126 : vector<16x128xf32>
    %c1_i32_70 = arith.constant 1 : i32
    %157 = tpu.dynamic_rotate %156 by %c1_i32_70 dim 0 : vector<16x128xf32>, i32 -> vector<16x128xf32>
    %158 = arith.mulf %25, %157 : vector<16x128xf32>
    %c15_i32_71 = arith.constant 15 : i32
    %159 = tpu.dynamic_rotate %156 by %c15_i32_71 dim 0 : vector<16x128xf32>, i32 -> vector<16x128xf32>
    %160 = arith.mulf %29, %159 : vector<16x128xf32>
    %c32_i32_72 = arith.constant 32 : i32
    %161 = tpu.dynamic_rotate %158 by %c32_i32_72 dim 1 : vector<16x128xf32>, i32 -> vector<16x128xf32>
    %162 = arith.addf %156, %161 : vector<16x128xf32>
    %c64_i32_73 = arith.constant 64 : i32
    %163 = tpu.dynamic_rotate %160 by %c64_i32_73 dim 1 : vector<16x128xf32>, i32 -> vector<16x128xf32>
    %164 = arith.addf %162, %163 : vector<16x128xf32>
    %165 = arith.addf %164, %34 : vector<16x128xf32>
    %166 = arith.truncf %165 : vector<16x128xf32> to vector<16x128xbf16>
    %c8 = arith.constant 8 : index
    %c0_74 = arith.constant 0 : index
    %c0_75 = arith.constant 0 : index
    %167 = vector.load %arg2[%c8, %c0_74, %c0_75] : memref<13x128x128xbf16, #tpu.memory_space<vmem>>, vector<1x128x128xbf16>
    %168 = vector.shape_cast %167 : vector<1x128x128xbf16> to vector<128x128xbf16>
    %cst_76 = arith.constant dense<0.000000e+00> : vector<16x128xf32>
    %169 = tpu.matmul %166, %168, %cst_76 {dimension_numbers = #tpu.dot_dimension_numbers<[1], [0], [0], [1], [0, 0, 1, 1], [], []>} : vector<16x128xbf16>, vector<128x128xbf16>, vector<16x128xf32> -> vector<16x128xf32>
    %cst_77 = arith.constant 2.000000e-01 : f32
    %170 = vector.broadcast %cst_77 : f32 to vector<16x128xf32>
    %171 = arith.mulf %170, %169 : vector<16x128xf32>
    %172 = arith.maximumf %169, %171 : vector<16x128xf32>
    %c1_i32_78 = arith.constant 1 : i32
    %173 = tpu.dynamic_rotate %172 by %c1_i32_78 dim 0 : vector<16x128xf32>, i32 -> vector<16x128xf32>
    %174 = arith.mulf %25, %173 : vector<16x128xf32>
    %c15_i32_79 = arith.constant 15 : i32
    %175 = tpu.dynamic_rotate %172 by %c15_i32_79 dim 0 : vector<16x128xf32>, i32 -> vector<16x128xf32>
    %176 = arith.mulf %29, %175 : vector<16x128xf32>
    %c32_i32_80 = arith.constant 32 : i32
    %177 = tpu.dynamic_rotate %174 by %c32_i32_80 dim 1 : vector<16x128xf32>, i32 -> vector<16x128xf32>
    %178 = arith.addf %172, %177 : vector<16x128xf32>
    %c64_i32_81 = arith.constant 64 : i32
    %179 = tpu.dynamic_rotate %176 by %c64_i32_81 dim 1 : vector<16x128xf32>, i32 -> vector<16x128xf32>
    %180 = arith.addf %178, %179 : vector<16x128xf32>
    %181 = arith.addf %180, %34 : vector<16x128xf32>
    %182 = arith.truncf %181 : vector<16x128xf32> to vector<16x128xbf16>
    %c9 = arith.constant 9 : index
    %c0_82 = arith.constant 0 : index
    %c0_83 = arith.constant 0 : index
    %183 = vector.load %arg2[%c9, %c0_82, %c0_83] : memref<13x128x128xbf16, #tpu.memory_space<vmem>>, vector<1x128x128xbf16>
    %184 = vector.shape_cast %183 : vector<1x128x128xbf16> to vector<128x128xbf16>
    %cst_84 = arith.constant dense<0.000000e+00> : vector<16x128xf32>
    %185 = tpu.matmul %182, %184, %cst_84 {dimension_numbers = #tpu.dot_dimension_numbers<[1], [0], [0], [1], [0, 0, 1, 1], [], []>} : vector<16x128xbf16>, vector<128x128xbf16>, vector<16x128xf32> -> vector<16x128xf32>
    %186 = arith.addf %185, %156 : vector<16x128xf32>
    %c1_i32_85 = arith.constant 1 : i32
    %187 = tpu.dynamic_rotate %186 by %c1_i32_85 dim 0 : vector<16x128xf32>, i32 -> vector<16x128xf32>
    %188 = arith.mulf %25, %187 : vector<16x128xf32>
    %c15_i32_86 = arith.constant 15 : i32
    %189 = tpu.dynamic_rotate %186 by %c15_i32_86 dim 0 : vector<16x128xf32>, i32 -> vector<16x128xf32>
    %190 = arith.mulf %29, %189 : vector<16x128xf32>
    %c32_i32_87 = arith.constant 32 : i32
    %191 = tpu.dynamic_rotate %188 by %c32_i32_87 dim 1 : vector<16x128xf32>, i32 -> vector<16x128xf32>
    %192 = arith.addf %186, %191 : vector<16x128xf32>
    %c64_i32_88 = arith.constant 64 : i32
    %193 = tpu.dynamic_rotate %190 by %c64_i32_88 dim 1 : vector<16x128xf32>, i32 -> vector<16x128xf32>
    %194 = arith.addf %192, %193 : vector<16x128xf32>
    %195 = arith.addf %194, %34 : vector<16x128xf32>
    %196 = arith.truncf %195 : vector<16x128xf32> to vector<16x128xbf16>
    %c10 = arith.constant 10 : index
    %c0_89 = arith.constant 0 : index
    %c0_90 = arith.constant 0 : index
    %197 = vector.load %arg2[%c10, %c0_89, %c0_90] : memref<13x128x128xbf16, #tpu.memory_space<vmem>>, vector<1x128x128xbf16>
    %198 = vector.shape_cast %197 : vector<1x128x128xbf16> to vector<128x128xbf16>
    %cst_91 = arith.constant dense<0.000000e+00> : vector<16x128xf32>
    %199 = tpu.matmul %196, %198, %cst_91 {dimension_numbers = #tpu.dot_dimension_numbers<[1], [0], [0], [1], [0, 0, 1, 1], [], []>} : vector<16x128xbf16>, vector<128x128xbf16>, vector<16x128xf32> -> vector<16x128xf32>
    %cst_92 = arith.constant 2.000000e-01 : f32
    %200 = vector.broadcast %cst_92 : f32 to vector<16x128xf32>
    %201 = arith.mulf %200, %199 : vector<16x128xf32>
    %202 = arith.maximumf %199, %201 : vector<16x128xf32>
    %c1_i32_93 = arith.constant 1 : i32
    %203 = tpu.dynamic_rotate %202 by %c1_i32_93 dim 0 : vector<16x128xf32>, i32 -> vector<16x128xf32>
    %204 = arith.mulf %25, %203 : vector<16x128xf32>
    %c15_i32_94 = arith.constant 15 : i32
    %205 = tpu.dynamic_rotate %202 by %c15_i32_94 dim 0 : vector<16x128xf32>, i32 -> vector<16x128xf32>
    %206 = arith.mulf %29, %205 : vector<16x128xf32>
    %c32_i32_95 = arith.constant 32 : i32
    %207 = tpu.dynamic_rotate %204 by %c32_i32_95 dim 1 : vector<16x128xf32>, i32 -> vector<16x128xf32>
    %208 = arith.addf %202, %207 : vector<16x128xf32>
    %c64_i32_96 = arith.constant 64 : i32
    %209 = tpu.dynamic_rotate %206 by %c64_i32_96 dim 1 : vector<16x128xf32>, i32 -> vector<16x128xf32>
    %210 = arith.addf %208, %209 : vector<16x128xf32>
    %211 = arith.addf %210, %34 : vector<16x128xf32>
    %212 = arith.truncf %211 : vector<16x128xf32> to vector<16x128xbf16>
    %c11 = arith.constant 11 : index
    %c0_97 = arith.constant 0 : index
    %c0_98 = arith.constant 0 : index
    %213 = vector.load %arg2[%c11, %c0_97, %c0_98] : memref<13x128x128xbf16, #tpu.memory_space<vmem>>, vector<1x128x128xbf16>
    %214 = vector.shape_cast %213 : vector<1x128x128xbf16> to vector<128x128xbf16>
    %cst_99 = arith.constant dense<0.000000e+00> : vector<16x128xf32>
    %215 = tpu.matmul %212, %214, %cst_99 {dimension_numbers = #tpu.dot_dimension_numbers<[1], [0], [0], [1], [0, 0, 1, 1], [], []>} : vector<16x128xbf16>, vector<128x128xbf16>, vector<16x128xf32> -> vector<16x128xf32>
    %cst_100 = arith.constant 2.000000e-01 : f32
    %216 = vector.broadcast %cst_100 : f32 to vector<16x128xf32>
    %217 = arith.mulf %216, %215 : vector<16x128xf32>
    %218 = arith.maximumf %215, %217 : vector<16x128xf32>
    %c1_i32_101 = arith.constant 1 : i32
    %219 = tpu.dynamic_rotate %218 by %c1_i32_101 dim 0 : vector<16x128xf32>, i32 -> vector<16x128xf32>
    %220 = arith.mulf %25, %219 : vector<16x128xf32>
    %c15_i32_102 = arith.constant 15 : i32
    %221 = tpu.dynamic_rotate %218 by %c15_i32_102 dim 0 : vector<16x128xf32>, i32 -> vector<16x128xf32>
    %222 = arith.mulf %29, %221 : vector<16x128xf32>
    %c16_i32_103 = arith.constant 16 : i32
    %223 = tpu.dynamic_rotate %220 by %c16_i32_103 dim 1 : vector<16x128xf32>, i32 -> vector<16x128xf32>
    %224 = arith.addf %218, %223 : vector<16x128xf32>
    %c32_i32_104 = arith.constant 32 : i32
    %225 = tpu.dynamic_rotate %222 by %c32_i32_104 dim 1 : vector<16x128xf32>, i32 -> vector<16x128xf32>
    %226 = arith.addf %224, %225 : vector<16x128xf32>
    %227 = arith.addf %226, %34 : vector<16x128xf32>
    %228 = arith.truncf %227 : vector<16x128xf32> to vector<16x128xbf16>
    %c12 = arith.constant 12 : index
    %c0_105 = arith.constant 0 : index
    %c0_106 = arith.constant 0 : index
    %229 = vector.load %arg2[%c12, %c0_105, %c0_106] : memref<13x128x128xbf16, #tpu.memory_space<vmem>>, vector<1x128x128xbf16>
    %230 = vector.shape_cast %229 : vector<1x128x128xbf16> to vector<128x128xbf16>
    %cst_107 = arith.constant dense<0.000000e+00> : vector<16x128xf32>
    %231 = tpu.matmul %228, %230, %cst_107 {dimension_numbers = #tpu.dot_dimension_numbers<[1], [0], [0], [1], [0, 0, 1, 1], [], []>} : vector<16x128xbf16>, vector<128x128xbf16>, vector<16x128xf32> -> vector<16x128xf32>
    %232 = arith.truncf %231 : vector<16x128xf32> to vector<16x128xbf16>
    %c0_108 = arith.constant 0 : index
    %c0_109 = arith.constant 0 : index
    %233 = vector.load %arg3[%c0_108, %c0_109] : memref<16x128xbf16, #tpu.memory_space<vmem>>, vector<16x128xbf16>
    tpu.vector_store %arg3[%c0_108, %c0_109], %232 {strides = array<i32>} : memref<16x128xbf16, #tpu.memory_space<vmem>>, vector<16x128xbf16>,
    return
  }
  func.func @transform_0(%arg0: i32) -> (i32, i32) {
    %c0_i32 = arith.constant 0 : i32
    %c0_i32_0 = arith.constant 0 : i32
    return %arg0, %c0_i32 : i32, i32
  }
  func.func @transform_1(%arg0: i32) -> (i32, i32, i32) {
    %c0_i32 = arith.constant 0 : i32
    %c0_i32_0 = arith.constant 0 : i32
    %c0_i32_1 = arith.constant 0 : i32
    %c0_i32_2 = arith.constant 0 : i32
    return %c0_i32, %c0_i32_0, %c0_i32_1 : i32, i32, i32
  }
  func.func @transform_2(%arg0: i32) -> (i32, i32) {
    %c0_i32 = arith.constant 0 : i32
    %c0_i32_0 = arith.constant 0 : i32
    return %arg0, %c0_i32 : i32, i32
  }
}

</mosaic_0001>

<bundles_post_ra>
// kernel: vae_conv_zero_forward.1
= control target key start
LH: loop header
LB: loop body
LE: loop exit
PB: predicated region body
PF: predicated region fallthrough
CT: control target
= control target key end

     0   :  { %7 = vsyncpa [#allocation4], 0  ;;  %s3410_s0 = inlined_call_operand.hbm [shape: f32[32,16], index: 0, kind: input, shape index: {}]   ;;  %s3411_s1 = inlined_call_operand.hbm [shape: bf16[13,128,128], index: 1, kind: input, shape index: {}]   ;;  %s3412_s2 = inlined_call_operand.vmem [shape: bf16[32,128], index: 2, kind: output, shape index: {}]  }
   0x1   :  { %9 = vsyncpa [#allocation4 + $0x1], 0 }
   0x2   :  { %10 = vsyncpa [#allocation6], 0  ;;  %s2876_s9 = smov 0   ;;  %s2878_s10 = smov 0  }
   0x3   :  { %s2880_s11 = smov 0   ;;  %s2882_s12 = smov 0  }
   0x4 LB: > { %s2084_s13 = sadd.s32 4294967295, %s2848_s12   ;;  %p36_p0 = scmp.ne.s32.totalorder %s2840_s10, %s2836_s9  ;;  %s2848_s12 = sphi %s2882_s12, %s3428_s12   ;;  %s2844_s11 = sphi %s2880_s11, %s3427_s11   ;;  %s2840_s10 = sphi %s2878_s10, %s3426_s10   ;;  %s2836_s9 = sphi %s2876_s9, %s3425_s9  }
   0x5   : > { %p2898_p1 = scmp.eq.s32.totalorder %s2084_s13, 0  ;;  %p2086_p2 = scmp.ge.s32.totalorder %s2848_s12, 1 }
   0x6   : > { %p94_p3 = scmp.lt.s32.totalorder %s2848_s12, 3  ;;  %s2850_s17 = smov [#allocation5]  }
   0x7   : > { %s3417_s14 = scalar_select %p2898_p1, 1, 0 }
   0x8   : > { %p2906_p4 = por %p2898_p1, %p36_p0  ;;  %p2910_p5 = pnand %p2086_p2, %p94_p3 }
   0x9   : > { %s106_s18 = sshll.u32 %s2850_s17, 4  ;;  %s2923_s20 = sadd.s32 1, %s2848_s12   ;;  %s107_s18 = int_to_ptr.vmem [resolvable:$true] %s106_s18 }
   0xa   : > { %s3418_s15 = scalar_select %p2906_p4, 1, 0 }
   0xb   : > { %s3419_s16 = scalar_select %p2910_p5, 1, 0 }
   0xc   : > { %p2599_p6 = pneg %p2910_p5  ;;  %s23_s21 = sadd.s32 1, %s2844_s11 }
   0xd   : > { %s20_s22 = ssub.s32 %s2848_s12, %s2923_s20  ;;  %s2767_s23 = scalar_lea.vmem %s107_s18, 13312 }
   0xe   : > { %p2918_p7 = pnand %p2599_p6, %p2898_p1  ;;  %p2768_p9 = scmp.ne.s32.totalorder %s107_s18, %s2767_s23 }
   0xf   : > { %p2775_p12 = scmp.lt.s32.totalorder %s107_s18, %s107_s18  ;;  %p2776_p13 = scmp.lt.s32.totalorder %s2767_s23, %s2767_s23 }
  0x10   : > { %p2758_p8 = pneg %p2918_p7 }
  0x11   : > { %p2777_p0 = por %p2776_p13, %p2775_p12 }
  0x12   : > { %p2770_p10 = pnand %p2768_p9, %p2758_p8 }
  0x14   : > { %p2771_p11 = pneg %p2770_p10 }
  0x16   : > { %p2778_p2 = pnand %p2777_p0, %p2771_p11 }
  0x18   : > { %2781 = shalt.err (!%p2778_p2)
}
  0x19   : > { %s2851_s24 = smov 64   ;;  %s2852_s25 = smov 4  }
  0x1a   : > { %2602 = dma.hbm_to_vmem [thread:$0]  (!%p2918_p7), %s3411_s1, 13312, %s107_s18, [#allocation6], %s2851_s24, %s2851_s24, %s2852_s25  }
  0x1b   : > { %p21_p3 = scmp.eq.s32.totalorder %s20_s22, 0  ;;  %p30_p6 = scmp.ne.s32.totalorder %s2844_s11, %s2840_s10 }
  0x1c   : > { %p31_p8 = scmp.eq.s32.totalorder %s2848_s12, 0  ;;  %p2608_p9 = scmp.lt.s32.totalorder %s2848_s12, 2 }
  0x1d   : > { %s2940_s28 = scalar_select %p21_p3, %s2844_s11, %s23_s21  }
  0x1e   : > { %p32_p10 = por %p31_p8, %p30_p6  ;;  %s120_s29 = sand.u32 1, %s2844_s11  }
  0x1f   : > { %s2089_s30 = sshll.u32 %s120_s29, 4  ;;  %s2208_s3 = sshll.u32 %s2848_s12, 8 }
  0x20   : > { %s2947_s6 = scalar_lea.hbm %s3410_s0, %s2208_s3  ;;  %s124_s7 = scalar_lea.vmem [#allocation3], %s2089_s30 }
  0x21   : > { %s131_s8 = sshll.u32 %s124_s7, 4  ;;  %p2951_p7 = pnand %p2608_p9, %p32_p10  ;;  %s2949_s8 = int_to_ptr.vmem [resolvable:$true] %s131_s8 }
  0x22   : > { %s2955_s17 = scalar_lea.sflag [#allocation4], %s120_s29  ;;  %s2782_s18 = scalar_lea.hbm %s2947_s6, 256 }
  0x23   : > { %p2783_p11 = scmp.ne.s32.totalorder %s2947_s6, %s2782_s18  ;;  %p2784_p12 = pneg %p2951_p7 }
  0x24   : > { %s2787_s22 = scalar_lea.hbm %s3410_s0, 512  ;;  %p2788_p2 = scmp.lt.s32.totalorder %s2947_s6, %s3410_s0 }
  0x25   : > { %p2785_p13 = pnand %p2784_p12, %p2783_p11  ;;  %p2789_p3 = scmp.lt.s32.totalorder %s2787_s22, %s2782_s18 }
  0x27   : > { %p2786_p0 = pneg %p2785_p13  ;;  %p2790_p6 = por %p2789_p3, %p2788_p2 }
  0x29   : > { %p2791_p8 = pnand %p2790_p6, %p2786_p0 }
  0x2b   : > { %2794 = shalt.err (!%p2791_p8)
}
  0x2c   : > { %s2795_s25 = scalar_lea.vmem %s2949_s8, 256  ;;  %s2853_s26 = smov [#allocation3]  }
  0x2d   : > { %p2796_p9 = scmp.ne.s32.totalorder %s2949_s8, %s2795_s25  ;;  %s2800_s27 = sshll.u32 %s2853_s26, 4  ;;  %s2801_s27 = int_to_ptr.vmem [resolvable:$false] %s2800_s27 }
  0x2e   : > { %s2802_s29 = scalar_lea.vmem %s2801_s27, 512  ;;  %p2803_p13 = scmp.lt.s32.totalorder %s2949_s8, %s2801_s27 }
  0x2f   : > { %p2798_p10 = pnand %p2796_p9, %p2784_p12  ;;  %p2804_p1 = scmp.lt.s32.totalorder %s2802_s29, %s2795_s25 }
  0x31   : > { %p2799_p11 = pneg %p2798_p10  ;;  %p2805_p4 = por %p2804_p1, %p2803_p13 }
  0x33   : > { %p2806_p5 = pnand %p2805_p4, %p2799_p11 }
  0x35   : > { %2809 = shalt.err (!%p2806_p5)
}
  0x36   : > { %s2854_s30 = smov 128   ;;  %s2855_s3 = smov 8  }
  0x37   : > { %2606 = dma.hbm_to_vmem [thread:$0]  (!%p2951_p7), %s2947_s6, 256, %s2949_s8, %s2955_s17, %s2854_s30, %s2854_s30, %s2855_s3  }
  0x38   : > { %p3422_p12 = scmp.ne.s32.totalorder %s3419_s16, 0 }
  0x39   : > { %s145_s4 = sand.u32 (!%p3422_p12), 1, %s2840_s10   ;;  %p3423_p1 = scmp.ne.s32.totalorder (!%p3422_p12), %s3418_s15, 0 }
  0x3a   : > { %143 = sbr.rel (%p3422_p12) target bundleno = 4373 (0x1115), region = 28  ;;  %s2093_s5 = sshll.u32 (!%p3422_p12), %s145_s4, 4 }
  0x3b   : > { %s146_s7 = scalar_lea.sflag (!%p3422_p12), [#allocation4], %s145_s4  ;;  %s149_s18 = scalar_lea.vmem (!%p3422_p12), [#allocation3], %s2093_s5 }
  0x3f   : > { %2827 = dma.done.wait (%p3423_p1), %s146_s7, 256  }
  0x40   : > { %2829 = vsyncadd (%p3423_p1), %s146_s7, 4294967040  ;;  %p3424_p4 = scmp.ne.s32.totalorder %s3417_s14, 0 }
  0x42   : > { %2831 = dma.done.wait (%p3424_p4), [#allocation6], 13312  }
  0x43   : > { %2833 = vsyncadd (%p3424_p4), [#allocation6], 4294953984  ;;  %v191_v0 = vlaneseq  ;;  %v2856_v1 = vmov 0.0   ;;  %vm186_vm0 = vcmask 130048   ;;  %v184_v4 = vld [vmem:[%s149_s18] sm:$0xff]  ;;  %v185_v5 = vld [vmem:[%s149_s18 + $0x8] sm:$0xff] }
  0x44   : > { %182 = vst [vmem:[#allocation2] sm:$0xff] %v2856_v1  ;;  %183 = vst [vmem:[#allocation2 + $0x8] sm:$0xff] %v2856_v1  ;;  %2333 = vmatprep.subr.bf16.mxu0 %v2856_v1  ;;  %2353 = vmatprep.subr.bf16.mxu1 %v2856_v1  ;;  %v2652_v8 = vld [vmem:[#allocation5 + $0x38] sm:$0xff]   ;;  %v2653_v9 = vld [vmem:[#allocation5 + $0x30] sm:$0xff]   ;;  %s2857_s14 = smov 32   ;;  %vm2858_vm5 = vmmov 0  }
  0x45   : > { %v2992_v2 = vshrl.u32 %v191_v0, 7  ;;  %187 = vst.msk [vmem:[#allocation2] sm:$0xff] %vm186_vm0, %v184_v4  ;;  %188 = vst.msk [vmem:[#allocation2 + $0x8] sm:$0xff] %vm186_vm0, %v185_v5  ;;  %2334 = vmatpush3.bf16.msra.mxu0 %v2652_v8  ;;  %v2654_v10 = vld [vmem:[#allocation5 + $0x28] sm:$0xff]   ;;  %v2655_v19 = vld [vmem:[#allocation5 + $0x20] sm:$0xff]   ;;  %2349 = vmatprep.mubr.msk.bf16.mxu0 %vm2858_vm5, %v2856_v1  ;;  %s2859_s15 = smov 16  }
  0x46   : > { %2335 = vmatprep.subr.bf16.mxu0 %v2856_v1  ;;  %v2656_v25 = vld [vmem:[#allocation5 + $0x18] sm:$0xff]   ;;  %2369 = vmatprep.mubr.msk.bf16.mxu1 %vm2858_vm5, %v2856_v1  ;;  %v2657_v27 = vld [vmem:[#allocation5 + $0x10] sm:$0xff]   ;;  %v2658_v28 = vld [vmem:[#allocation5 + $0x8] sm:$0xff]   ;;  %v231_v31 = vand.u32 127, %v191_v0  ;;  %s2860_s16 = smov 64   ;;  %s2095_s6 = sshll.u32 %s2084_s13, 1 }
  0x47   : > { %v193_v3 = vadd.s32 8, %v2992_v2  ;;  %v198_v6 = vand.u32 15, %v2992_v2  ;;  %vm237_vm3 = vcmp.lt.s32.totalorder %v2992_v2, 1  ;;  %vm244_vm4 = vcmp.lt.s32.totalorder %v2992_v2, 7  ;;  %v2659_v29 = vld [vmem:[#allocation5] sm:$0xff]   ;;  %v2660_v43 = vld [vmem:[#allocation5 + $0x78] sm:$0xff]  }
  0x48   : > { %vm232_vm6 = vcmp.eq.s32.totalorder %v231_v31, 127  ;;  %2354 = vmatpush3.bf16.msra.mxu1 %v2660_v43  ;;  %v2661_v44 = vld [vmem:[#allocation5 + $0x70] sm:$0xff]   ;;  %v2662_v45 = vld [vmem:[#allocation5 + $0x68] sm:$0xff]   ;;  %v2663_v46 = vld [vmem:[#allocation5 + $0x60] sm:$0xff]   ;;  %p176_p5 = scmp.lt.s32.totalorder %s2095_s6, 3 }
  0x49   : > { %v205_v7 = vand.u32 15, %v193_v3  ;;  %vm218_vm1 = vcmp.ge.s32.totalorder %v198_v6, 1  ;;  %2336 = vmatpush3.bf16.msra.mxu0 %v2653_v9  ;;  %v3032_v38 = vsel %vm232_vm6, 1.0, %v2856_v1  ;;  %2355 = vmatprep.subr.bf16.mxu1 %v2856_v1  ;;  %v2664_v47 = vld [vmem:[#allocation5 + $0x58] sm:$0xff]   ;;  %v2665_v48 = vld [vmem:[#allocation5 + $0x50] sm:$0xff]   ;;  %v2666_v52 = vld [vmem:[#allocation5 + $0x48] sm:$0xff]  }
  0x4a   : > { %v3000_v13 = vsel %vm218_vm1, 1.0, %v2856_v1  ;;  %2337 = vmatprep.subr.bf16.mxu0 %v2856_v1  ;;  %v2667_v57 = vld [vmem:[#allocation5 + $0x40] sm:$0xff]   ;;  %s3430_s6 = smov (!%p176_p5, %s2095_s6), 3 }
  0x4b   : > { %vm225_vm2 = vcmp.le.s32.totalorder %v205_v7, 14  ;;  %s2096_s8 = sshll.u32 %s3430_s6, 2 }
  0x4c   : > { %v189_v11 = vld [vmem:[#allocation2] sm:$0xff]  ;;  %v190_v12 = vld [vmem:[#allocation2 + $0x8] sm:$0xff]  ;;  %v3003_v14 = vsel %vm225_vm2, 1.0, %v2856_v1  ;;  %2356 = vmatpush3.bf16.msra.mxu1 %v2661_v44  ;;  %s179_s19 = scalar_lea.vmem %s3412_s2, %s2096_s8 }
  0x4d   : > { %v235_v15 = vrot.slane %v189_v11, 7  ;;  %v236_v16 = vrot.slane %v190_v12, 7  ;;  %v242_v17 = vrot.slane %v189_v11, 1  ;;  %v243_v18 = vrot.slane %v190_v12, 1  ;;  %2338 = vmatpush3.bf16.msra.mxu0 %v2654_v10  ;;  %2357 = vmatprep.subr.bf16.mxu1 %v2856_v1 }
  0x4e   : > { %2339 = vmatprep.subr.bf16.mxu0 %v2856_v1 }
  0x4f   : > { %v239_v20 = vsel %vm237_vm3, %v236_v16, %v235_v15  ;;  %v245_v21 = vsel %vm244_vm4, %v242_v17, %v243_v18  ;;  %v246_v22 = vsel %vm244_vm4, %v243_v18, %v242_v17  ;;  %v238_v26 = vsel %vm237_vm3, %v235_v15, %v236_v16 }
  0x50   : > { %v240_v23 = vmul.f32 %v3000_v13, %v239_v20  ;;  %255 = vrot.lane.b32.xlu1 %v245_v21, %s2857_s14  ;;  %v248_v24 = vmul.f32 %v3003_v14, %v246_v22  ;;  %2358 = vmatpush3.bf16.msra.mxu1 %v2662_v45  ;;  %v2668_v20 = vld [vmem:[#allocation5 + $0xb8] sm:$0xff]   ;;  %v2669_v21 = vld [vmem:[#allocation5 + $0xb0] sm:$0xff]   ;;  %v2670_v22 = vld [vmem:[#allocation5 + $0xa8] sm:$0xff]  }
  0x51   : > { %2340 = vmatpush3.bf16.msra.mxu0 %v2655_v19  ;;  %2359 = vmatprep.subr.bf16.mxu1 %v2856_v1 }
  0x52   : > { %249 = vrot.lane.b32.xlu0 %v240_v23, %s2859_s15  ;;  %2341 = vmatprep.subr.bf16.mxu0 %v2856_v1  ;;  %v2671_v23 = vld [vmem:[#allocation5 + $0xa0] sm:$0xff]  }
  0x54   : > { %257 = vrot.lane.b32.xlu1 %v248_v24, %s2857_s14  ;;  %2360 = vmatpush3.bf16.msra.mxu1 %v2663_v46  ;;  %v2672_v24 = vld [vmem:[#allocation5 + $0x98] sm:$0xff]  }
  0x55   : > { %2342 = vmatpush3.bf16.msra.mxu0 %v2656_v25  ;;  %2361 = vmatprep.subr.bf16.mxu1 %v2856_v1  ;;  %v2673_v25 = vld [vmem:[#allocation5 + $0x90] sm:$0xff]  }
  0x56   : > { %251 = vrot.lane.b32.xlu0 %v238_v26, %s2859_s15  ;;  %2343 = vmatprep.subr.bf16.mxu0 %v2856_v1 }
  0x58   : > { %2362 = vmatpush3.bf16.msra.mxu1 %v2664_v47 }
  0x59   : > { %2344 = vmatpush3.bf16.msra.mxu0 %v2657_v27  ;;  %2363 = vmatprep.subr.bf16.mxu1 %v2856_v1 }
  0x5a   : > { %2345 = vmatprep.subr.bf16.mxu0 %v2856_v1 }
  0x5c   : > { %2364 = vmatpush3.bf16.msra.mxu1 %v2665_v48 }
  0x5d   : > { %2346 = vmatpush3.bf16.msra.mxu0 %v2658_v28  ;;  %2365 = vmatprep.subr.bf16.mxu1 %v2856_v1 }
  0x5e   : > { %2347 = vmatprep.subr.bf16.mxu0 %v2856_v1 }
  0x60   : > { %2366 = vmatpush3.bf16.msra.mxu1 %v2666_v52 }
  0x61   : > { %2348 = vmatpush3.bf16.msra.mxu0 %v2659_v29  ;;  %2367 = vmatprep.subr.bf16.mxu1 %v2856_v1  ;;  %v2674_v29 = vld [vmem:[#allocation5 + $0x88] sm:$0xff]  }
  0x62   : > { %2373 = vmatprep.subr.bf16.mxu0 %v2856_v1 }
  0x64   : > { %2368 = vmatpush3.bf16.msra.mxu1 %v2667_v57 }
  0x65   : > { %2393 = vmatprep.subr.bf16.mxu1 %v2856_v1 }
  0xc2   : > { %v256_v30 = vpop.permute.xlu1 %255 }
  0xc4   : > { %v250_v32 = vpop.permute.xlu0 %249 }
  0xc5   : > { %v253_v33 = vadd.f32 %v250_v32, %v189_v11 }
  0xc6   : > { %v258_v35 = vpop.permute.xlu1 %257 }
  0xc7   : > { %v259_v36 = vadd.f32 %v256_v30, %v253_v33 }
  0xc8   : > { %v252_v34 = vpop.permute.xlu0 %251 }
  0xc9   : > { %v254_v37 = vadd.f32 %v252_v34, %v190_v12  ;;  %v261_v40 = vadd.f32 %v3032_v38, %v259_v36  ;;  %v2675_v34 = vld [vmem:[#allocation5 + $0x80] sm:$0xff]  }
  0xcb   : > { %v260_v39 = vadd.f32 %v258_v35, %v254_v37 }
  0xcd   : > { %v262_v41 = vadd.f32 %v3032_v38, %v260_v39 }
  0xcf   : > { %v263_v42 = vpack.c.bf16 %v262_v41, %v261_v40 }
  0xd1   : > { %2350 = vmatmul.mubr.bf16.vlgmr.msra.gmra.mxu0 %v263_v42 }
  0xd2   : > { %2389 = vmatprep.mubr.msk.bf16.mxu0 %vm2858_vm5, %v2856_v1  ;;  %2374 = vmatpush3.bf16.msra.mxu0 %v2668_v20 }
  0xd3   : > { %2375 = vmatprep.subr.bf16.mxu0 %v2856_v1 }
  0xd6   : > { %2376 = vmatpush3.bf16.msra.mxu0 %v2669_v21 }
  0xd7   : > { %2377 = vmatprep.subr.bf16.mxu0 %v2856_v1 }
  0xda   : > { %2378 = vmatpush3.bf16.msra.mxu0 %v2670_v22 }
  0xdb   : > { %2379 = vmatprep.subr.bf16.mxu0 %v2856_v1 }
  0xde   : > { %2380 = vmatpush3.bf16.msra.mxu0 %v2671_v23 }
  0xdf   : > { %2381 = vmatprep.subr.bf16.mxu0 %v2856_v1 }
  0xe2   : > { %2382 = vmatpush3.bf16.msra.mxu0 %v2672_v24 }
  0xe3   : > { %2383 = vmatprep.subr.bf16.mxu0 %v2856_v1 }
  0xe6   : > { %2384 = vmatpush3.bf16.msra.mxu0 %v2673_v25 }
  0xe7   : > { %2385 = vmatprep.subr.bf16.mxu0 %v2856_v1 }
  0xea   : > { %2386 = vmatpush3.bf16.msra.mxu0 %v2674_v29 }
  0xeb   : > { %2387 = vmatprep.subr.bf16.mxu0 %v2856_v1 }
  0xee   : > { %2388 = vmatpush3.bf16.msra.mxu0 %v2675_v34  ;;  %v2685_v34 = vld [vmem:[#allocation5 + $0x130] sm:$0xff]  }
  0xef   : > { %2413 = vmatprep.subr.bf16.mxu0 %v2856_v1 }
 0x191   : > { %v362_v49 = vpop.f32.mrf.mxu0 }
 0x192   : > { %v369_v50 = vmul.f32 0.2, %v362_v49 }
 0x193   : > { %v2351_v51 = vpop.f32.mrf.mxu0 }
 0x194   : > { %v3044_v54 = vmax.f32 %v362_v49, %v369_v50 }
 0x195   : > { %v365_v53 = vpop.f32.mrf.mxu0 }
 0x196   : > { %v370_v55 = vmul.f32 0.2, %v365_v53  ;;  %v373_v59 = vrot.slane %v3044_v54, 7  ;;  %v379_v61 = vrot.slane %v3044_v54, 1 }
 0x197   : > { %v2352_v56 = vpop.f32.mrf.mxu0 }
 0x198   : > { %v3047_v58 = vmax.f32 %v365_v53, %v370_v55 }
 0x19a   : > { %v374_v60 = vrot.slane %v3047_v58, 7  ;;  %v380_v62 = vrot.slane %v3047_v58, 1 }
 0x19c   : > { %v375_v63 = vsel %vm237_vm3, %v373_v59, %v374_v60  ;;  %v376_v0 = vsel %vm237_vm3, %v374_v60, %v373_v59  ;;  %v382_v3 = vsel %vm244_vm4, %v380_v62, %v379_v61  ;;  %v381_v6 = vsel %vm244_vm4, %v379_v61, %v380_v62  ;;  %v2676_v60 = vld [vmem:[#allocation5 + $0xf8] sm:$0xff]   ;;  %v2677_v61 = vld [vmem:[#allocation5 + $0xf0] sm:$0xff]   ;;  %v2678_v62 = vld [vmem:[#allocation5 + $0xe8] sm:$0xff]  }
 0x19d   : > { %387 = vrot.lane.b32.xlu1 %v375_v63, %s2857_s14  ;;  %v377_v4 = vmul.f32 %v3000_v13, %v376_v0  ;;  %v384_v5 = vmul.f32 %v3003_v14, %v382_v3  ;;  %v2679_v63 = vld [vmem:[#allocation5 + $0xe0] sm:$0xff]   ;;  %v2680_v0 = vld [vmem:[#allocation5 + $0xd8] sm:$0xff]   ;;  %v2681_v3 = vld [vmem:[#allocation5 + $0xd0] sm:$0xff]  }
 0x19f   : > { %385 = vrot.lane.b32.xlu0 %v377_v4, %s2857_s14 }
 0x1a1   : > { %393 = vrot.lane.b32.xlu1 %v384_v5, %s2860_s16  ;;  %v2682_v5 = vld [vmem:[#allocation5 + $0xc8] sm:$0xff]  }
 0x1a3   : > { %391 = vrot.lane.b32.xlu0 %v381_v6, %s2860_s16 }
 0x20f   : > { %v388_v7 = vpop.permute.xlu1 %387 }
 0x210   : > { %v390_v9 = vadd.f32 %v388_v7, %v3047_v58 }
 0x211   : > { %v386_v8 = vpop.permute.xlu0 %385 }
 0x212   : > { %v389_v11 = vadd.f32 %v386_v8, %v3044_v54 }
 0x213   : > { %v394_v10 = vpop.permute.xlu1 %393 }
 0x214   : > { %v396_v12 = vadd.f32 %v394_v10, %v390_v9  ;;  %v2683_v9 = vld [vmem:[#allocation5 + $0xc0] sm:$0xff]  }
 0x215   : > { %v392_v15 = vpop.permute.xlu0 %391 }
 0x216   : > { %v395_v16 = vadd.f32 %v392_v15, %v389_v11  ;;  %v398_v17 = vadd.f32 %v3032_v38, %v396_v12 }
 0x218   : > { %v397_v18 = vadd.f32 %v3032_v38, %v395_v16 }
 0x21a   : > { %v399_v19 = vpack.c.bf16 %v398_v17, %v397_v18 }
 0x21c   : > { %2370 = vmatmul.mubr.bf16.vlgmr.msra.gmra.mxu1 %v399_v19 }
 0x21d   : > { %2409 = vmatprep.mubr.msk.bf16.mxu1 %vm2858_vm5, %v2856_v1  ;;  %2394 = vmatpush3.bf16.msra.mxu1 %v2676_v60 }
 0x21e   : > { %2395 = vmatprep.subr.bf16.mxu1 %v2856_v1 }
 0x221   : > { %2396 = vmatpush3.bf16.msra.mxu1 %v2677_v61 }
 0x222   : > { %2397 = vmatprep.subr.bf16.mxu1 %v2856_v1 }
 0x225   : > { %2398 = vmatpush3.bf16.msra.mxu1 %v2678_v62 }
 0x226   : > { %2399 = vmatprep.subr.bf16.mxu1 %v2856_v1 }
 0x229   : > { %2400 = vmatpush3.bf16.msra.mxu1 %v2679_v63 }
 0x22a   : > { %2401 = vmatprep.subr.bf16.mxu1 %v2856_v1 }
 0x22d   : > { %2402 = vmatpush3.bf16.msra.mxu1 %v2680_v0 }
 0x22e   : > { %2403 = vmatprep.subr.bf16.mxu1 %v2856_v1 }
 0x231   : > { %2404 = vmatpush3.bf16.msra.mxu1 %v2681_v3 }
 0x232   : > { %2405 = vmatprep.subr.bf16.mxu1 %v2856_v1 }
 0x235   : > { %2406 = vmatpush3.bf16.msra.mxu1 %v2682_v5 }
 0x236   : > { %2407 = vmatprep.subr.bf16.mxu1 %v2856_v1 }
 0x239   : > { %2408 = vmatpush3.bf16.msra.mxu1 %v2683_v9 }
 0x23a   : > { %2433 = vmatprep.subr.bf16.mxu1 %v2856_v1 }
 0x2dc   : > { %v499_v26 = vpop.f32.mrf.mxu1 }
 0x2dd   : > { %v506_v27 = vmul.f32 0.2, %v499_v26 }
 0x2de   : > { %v2371_v28 = vpop.f32.mrf.mxu1 }
 0x2df   : > { %v508_v31 = vmax.f32 %v499_v26, %v506_v27 }
 0x2e0   : > { %v502_v30 = vpop.f32.mrf.mxu1 }
 0x2e1   : > { %v507_v32 = vmul.f32 0.2, %v502_v30  ;;  %v516_v36 = vrot.slane %v508_v31, 1  ;;  %v510_v39 = vrot.slane %v508_v31, 7 }
 0x2e2   : > { %v2372_v33 = vpop.f32.mrf.mxu1 }
 0x2e3   : > { %v509_v35 = vmax.f32 %v502_v30, %v507_v32  ;;  %v2684_v33 = vld [vmem:[#allocation5 + $0x138] sm:$0xff]  }
 0x2e5   : > { %v517_v37 = vrot.slane %v509_v35, 1  ;;  %v511_v40 = vrot.slane %v509_v35, 7 }
 0x2e7   : > { %v512_v41 = vsel %vm237_vm3, %v510_v39, %v511_v40  ;;  %v513_v42 = vsel %vm237_vm3, %v511_v40, %v510_v39  ;;  %v519_v43 = vsel %vm244_vm4, %v517_v37, %v516_v36  ;;  %v518_v46 = vsel %vm244_vm4, %v516_v36, %v517_v37  ;;  %v2687_v36 = vld [vmem:[#allocation5 + $0x120] sm:$0xff]   ;;  %v2688_v37 = vld [vmem:[#allocation5 + $0x118] sm:$0xff]   ;;  %v2689_v39 = vld [vmem:[#allocation5 + $0x110] sm:$0xff]  }
 0x2e8   : > { %524 = vrot.lane.b32.xlu1 %v512_v41, %s2857_s14  ;;  %v514_v44 = vmul.f32 %v3000_v13, %v513_v42  ;;  %v521_v45 = vmul.f32 %v3003_v14, %v519_v43  ;;  %v2690_v43 = vld [vmem:[#allocation5 + $0x108] sm:$0xff]  }
 0x2ea   : > { %522 = vrot.lane.b32.xlu0 %v514_v44, %s2857_s14 }
 0x2ec   : > { %530 = vrot.lane.b32.xlu1 %v521_v45, %s2860_s16 }
 0x2ee   : > { %528 = vrot.lane.b32.xlu0 %v518_v46, %s2860_s16 }
 0x35a   : > { %v525_v47 = vpop.permute.xlu1 %524 }
 0x35b   : > { %v527_v49 = vadd.f32 %v525_v47, %v509_v35  ;;  %v2686_v35 = vld [vmem:[#allocation5 + $0x128] sm:$0xff]  }
 0x35c   : > { %v523_v48 = vpop.permute.xlu0 %522 }
 0x35d   : > { %v526_v51 = vadd.f32 %v523_v48, %v508_v31  ;;  %v2691_v48 = vld [vmem:[#allocation5 + $0x100] sm:$0xff]  }
 0x35e   : > { %v531_v50 = vpop.permute.xlu1 %530 }
 0x35f   : > { %v533_v52 = vadd.f32 %v531_v50, %v527_v49 }
 0x360   : > { %v529_v53 = vpop.permute.xlu0 %528 }
 0x361   : > { %v532_v55 = vadd.f32 %v529_v53, %v526_v51  ;;  %v535_v56 = vadd.f32 %v3032_v38, %v533_v52 }
 0x363   : > { %v534_v57 = vadd.f32 %v3032_v38, %v532_v55 }
 0x365   : > { %v536_v59 = vpack.c.bf16 %v535_v56, %v534_v57 }
 0x367   : > { %2390 = vmatmul.mubr.bf16.vlgmr.msra.gmra.mxu0 %v536_v59 }
 0x368   : > { %2429 = vmatprep.mubr.msk.bf16.mxu0 %vm2858_vm5, %v2856_v1  ;;  %2414 = vmatpush3.bf16.msra.mxu0 %v2684_v33 }
 0x369   : > { %2415 = vmatprep.subr.bf16.mxu0 %v2856_v1 }
 0x36c   : > { %2416 = vmatpush3.bf16.msra.mxu0 %v2685_v34 }
 0x36d   : > { %2417 = vmatprep.subr.bf16.mxu0 %v2856_v1 }
 0x370   : > { %2418 = vmatpush3.bf16.msra.mxu0 %v2686_v35 }
 0x371   : > { %2419 = vmatprep.subr.bf16.mxu0 %v2856_v1 }
 0x374   : > { %2420 = vmatpush3.bf16.msra.mxu0 %v2687_v36 }
 0x375   : > { %2421 = vmatprep.subr.bf16.mxu0 %v2856_v1 }
 0x378   : > { %2422 = vmatpush3.bf16.msra.mxu0 %v2688_v37 }
 0x379   : > { %2423 = vmatprep.subr.bf16.mxu0 %v2856_v1 }
 0x37c   : > { %2424 = vmatpush3.bf16.msra.mxu0 %v2689_v39 }
 0x37d   : > { %2425 = vmatprep.subr.bf16.mxu0 %v2856_v1 }
 0x380   : > { %2426 = vmatpush3.bf16.msra.mxu0 %v2690_v43 }
 0x381   : > { %2427 = vmatprep.subr.bf16.mxu0 %v2856_v1 }
 0x384   : > { %2428 = vmatpush3.bf16.msra.mxu0 %v2691_v48 }
 0x385   : > { %2453 = vmatprep.subr.bf16.mxu0 %v2856_v1 }
 0x427   : > { %v636_v4 = vpop.f32.mrf.mxu0 }
 0x428   : > { %v637_v7 = vadd.f32 %v636_v4, %v3044_v54 }
 0x429   : > { %v2391_v6 = vpop.f32.mrf.mxu0 }
 0x42a   : > { %v643_v12 = vrot.slane %v637_v7, 7  ;;  %v649_v15 = vrot.slane %v637_v7, 1 }
 0x42b   : > { %v639_v8 = vpop.f32.mrf.mxu0 }
 0x42c   : > { %v640_v10 = vadd.f32 %v639_v8, %v3047_v58 }
 0x42d   : > { %v2392_v11 = vpop.f32.mrf.mxu0 }
 0x42e   : > { %v644_v16 = vrot.slane %v640_v10, 7  ;;  %v650_v17 = vrot.slane %v640_v10, 1  ;;  %v2692_v11 = vld [vmem:[#allocation5 + $0x178] sm:$0xff]  }
 0x430   : > { %v645_v18 = vsel %vm237_vm3, %v643_v12, %v644_v16  ;;  %v646_v54 = vsel %vm237_vm3, %v644_v16, %v643_v12  ;;  %v652_v19 = vsel %vm244_vm4, %v650_v17, %v649_v15  ;;  %v651_v21 = vsel %vm244_vm4, %v649_v15, %v650_v17  ;;  %v2693_v12 = vld [vmem:[#allocation5 + $0x170] sm:$0xff]   ;;  %v2694_v15 = vld [vmem:[#allocation5 + $0x168] sm:$0xff]   ;;  %v2695_v16 = vld [vmem:[#allocation5 + $0x160] sm:$0xff]  }
 0x431   : > { %657 = vrot.lane.b32.xlu1 %v645_v18, %s2857_s14  ;;  %v647_v58 = vmul.f32 %v3000_v13, %v646_v54  ;;  %v654_v20 = vmul.f32 %v3003_v14, %v652_v19  ;;  %v2696_v17 = vld [vmem:[#allocation5 + $0x158] sm:$0xff]   ;;  %v2697_v18 = vld [vmem:[#allocation5 + $0x150] sm:$0xff]  }
 0x433   : > { %655 = vrot.lane.b32.xlu0 %v647_v58, %s2857_s14 }
 0x435   : > { %663 = vrot.lane.b32.xlu1 %v654_v20, %s2860_s16  ;;  %v2698_v20 = vld [vmem:[#allocation5 + $0x148] sm:$0xff]  }
 0x437   : > { %661 = vrot.lane.b32.xlu0 %v651_v21, %s2860_s16 }
 0x4a3   : > { %v658_v22 = vpop.permute.xlu1 %657 }
 0x4a4   : > { %v660_v24 = vadd.f32 %v658_v22, %v640_v10 }
 0x4a5   : > { %v656_v23 = vpop.permute.xlu0 %655 }
 0x4a6   : > { %v659_v26 = vadd.f32 %v656_v23, %v637_v7 }
 0x4a7   : > { %v664_v25 = vpop.permute.xlu1 %663 }
 0x4a8   : > { %v666_v27 = vadd.f32 %v664_v25, %v660_v24  ;;  %v2699_v25 = vld [vmem:[#allocation5 + $0x140] sm:$0xff]  }
 0x4a9   : > { %v662_v28 = vpop.permute.xlu0 %661 }
 0x4aa   : > { %v665_v29 = vadd.f32 %v662_v28, %v659_v26  ;;  %v668_v30 = vadd.f32 %v3032_v38, %v666_v27 }
 0x4ac   : > { %v667_v31 = vadd.f32 %v3032_v38, %v665_v29 }
 0x4ae   : > { %v669_v32 = vpack.c.bf16 %v668_v30, %v667_v31 }
 0x4b0   : > { %2410 = vmatmul.mubr.bf16.vlgmr.msra.gmra.mxu1 %v669_v32 }
 0x4b1   : > { %2449 = vmatprep.mubr.msk.bf16.mxu1 %vm2858_vm5, %v2856_v1  ;;  %2434 = vmatpush3.bf16.msra.mxu1 %v2692_v11 }
 0x4b2   : > { %2435 = vmatprep.subr.bf16.mxu1 %v2856_v1 }
 0x4b5   : > { %2436 = vmatpush3.bf16.msra.mxu1 %v2693_v12 }
 0x4b6   : > { %2437 = vmatprep.subr.bf16.mxu1 %v2856_v1 }
 0x4b9   : > { %2438 = vmatpush3.bf16.msra.mxu1 %v2694_v15 }
 0x4ba   : > { %2439 = vmatprep.subr.bf16.mxu1 %v2856_v1 }
 0x4bd   : > { %2440 = vmatpush3.bf16.msra.mxu1 %v2695_v16 }
 0x4be   : > { %2441 = vmatprep.subr.bf16.mxu1 %v2856_v1 }
 0x4c1   : > { %2442 = vmatpush3.bf16.msra.mxu1 %v2696_v17 }
 0x4c2   : > { %2443 = vmatprep.subr.bf16.mxu1 %v2856_v1 }
 0x4c5   : > { %2444 = vmatpush3.bf16.msra.mxu1 %v2697_v18 }
 0x4c6   : > { %2445 = vmatprep.subr.bf16.mxu1 %v2856_v1 }
 0x4c9   : > { %2446 = vmatpush3.bf16.msra.mxu1 %v2698_v20 }
 0x4ca   : > { %2447 = vmatprep.subr.bf16.mxu1 %v2856_v1 }
 0x4cd   : > { %2448 = vmatpush3.bf16.msra.mxu1 %v2699_v25  ;;  %v2709_v25 = vld [vmem:[#allocation5 + $0x1f0] sm:$0xff]  }
 0x4ce   : > { %2473 = vmatprep.subr.bf16.mxu1 %v2856_v1 }
 0x570   : > { %v769_v40 = vpop.f32.mrf.mxu1 }
 0x571   : > { %v776_v41 = vmul.f32 0.2, %v769_v40 }
 0x572   : > { %v2411_v42 = vpop.f32.mrf.mxu1 }
 0x573   : > { %v3134_v45 = vmax.f32 %v769_v40, %v776_v41 }
 0x574   : > { %v772_v44 = vpop.f32.mrf.mxu1 }
 0x575   : > { %v777_v46 = vmul.f32 0.2, %v772_v44  ;;  %v780_v50 = vrot.slane %v3134_v45, 7  ;;  %v786_v52 = vrot.slane %v3134_v45, 1 }
 0x576   : > { %v2412_v47 = vpop.f32.mrf.mxu1 }
 0x577   : > { %v3137_v49 = vmax.f32 %v772_v44, %v777_v46 }
 0x579   : > { %v781_v51 = vrot.slane %v3137_v49, 7  ;;  %v787_v53 = vrot.slane %v3137_v49, 1 }
 0x57b   : > { %v782_v55 = vsel %vm237_vm3, %v780_v50, %v781_v51  ;;  %v783_v56 = vsel %vm237_vm3, %v781_v51, %v780_v50  ;;  %v789_v57 = vsel %vm244_vm4, %v787_v53, %v786_v52  ;;  %v788_v61 = vsel %vm244_vm4, %v786_v52, %v787_v53  ;;  %v2700_v51 = vld [vmem:[#allocation5 + $0x1b8] sm:$0xff]   ;;  %v2701_v52 = vld [vmem:[#allocation5 + $0x1b0] sm:$0xff]   ;;  %v2702_v53 = vld [vmem:[#allocation5 + $0x1a8] sm:$0xff]  }
 0x57c   : > { %794 = vrot.lane.b32.xlu1 %v782_v55, %s2857_s14  ;;  %v784_v59 = vmul.f32 %v3000_v13, %v783_v56  ;;  %v791_v60 = vmul.f32 %v3003_v14, %v789_v57  ;;  %v2703_v55 = vld [vmem:[#allocation5 + $0x1a0] sm:$0xff]   ;;  %v2704_v56 = vld [vmem:[#allocation5 + $0x198] sm:$0xff]   ;;  %v2705_v57 = vld [vmem:[#allocation5 + $0x190] sm:$0xff]  }
 0x57e   : > { %792 = vrot.lane.b32.xlu0 %v784_v59, %s2857_s14 }
 0x580   : > { %800 = vrot.lane.b32.xlu1 %v791_v60, %s2860_s16  ;;  %v2706_v60 = vld [vmem:[#allocation5 + $0x188] sm:$0xff]  }
 0x582   : > { %798 = vrot.lane.b32.xlu0 %v788_v61, %s2860_s16 }
 0x5ee   : > { %v795_v62 = vpop.permute.xlu1 %794 }
 0x5ef   : > { %v797_v0 = vadd.f32 %v795_v62, %v3137_v49 }
 0x5f0   : > { %v793_v63 = vpop.permute.xlu0 %792 }
 0x5f1   : > { %v796_v4 = vadd.f32 %v793_v63, %v3134_v45 }
 0x5f2   : > { %v801_v3 = vpop.permute.xlu1 %800 }
 0x5f3   : > { %v803_v5 = vadd.f32 %v801_v3, %v797_v0  ;;  %v2707_v0 = vld [vmem:[#allocation5 + $0x180] sm:$0xff]  }
 0x5f4   : > { %v799_v6 = vpop.permute.xlu0 %798 }
 0x5f5   : > { %v802_v7 = vadd.f32 %v799_v6, %v796_v4  ;;  %v805_v8 = vadd.f32 %v3032_v38, %v803_v5 }
 0x5f7   : > { %v804_v9 = vadd.f32 %v3032_v38, %v802_v7 }
 0x5f9   : > { %v806_v10 = vpack.c.bf16 %v805_v8, %v804_v9 }
 0x5fb   : > { %2430 = vmatmul.mubr.bf16.vlgmr.msra.gmra.mxu0 %v806_v10 }
 0x5fc   : > { %2469 = vmatprep.mubr.msk.bf16.mxu0 %vm2858_vm5, %v2856_v1  ;;  %2454 = vmatpush3.bf16.msra.mxu0 %v2700_v51 }
 0x5fd   : > { %2455 = vmatprep.subr.bf16.mxu0 %v2856_v1 }
 0x600   : > { %2456 = vmatpush3.bf16.msra.mxu0 %v2701_v52 }
 0x601   : > { %2457 = vmatprep.subr.bf16.mxu0 %v2856_v1 }
 0x604   : > { %2458 = vmatpush3.bf16.msra.mxu0 %v2702_v53 }
 0x605   : > { %2459 = vmatprep.subr.bf16.mxu0 %v2856_v1 }
 0x608   : > { %2460 = vmatpush3.bf16.msra.mxu0 %v2703_v55 }
 0x609   : > { %2461 = vmatprep.subr.bf16.mxu0 %v2856_v1 }
 0x60c   : > { %2462 = vmatpush3.bf16.msra.mxu0 %v2704_v56 }
 0x60d   : > { %2463 = vmatprep.subr.bf16.mxu0 %v2856_v1 }
 0x610   : > { %2464 = vmatpush3.bf16.msra.mxu0 %v2705_v57 }
 0x611   : > { %2465 = vmatprep.subr.bf16.mxu0 %v2856_v1 }
 0x614   : > { %2466 = vmatpush3.bf16.msra.mxu0 %v2706_v60 }
 0x615   : > { %2467 = vmatprep.subr.bf16.mxu0 %v2856_v1 }
 0x618   : > { %2468 = vmatpush3.bf16.msra.mxu0 %v2707_v0 }
 0x619   : > { %2493 = vmatprep.subr.bf16.mxu0 %v2856_v1 }
 0x6bb   : > { %v906_v54 = vpop.f32.mrf.mxu0 }
 0x6bc   : > { %v913_v19 = vmul.f32 0.2, %v906_v54 }
 0x6bd   : > { %v2431_v58 = vpop.f32.mrf.mxu0 }
 0x6be   : > { %v915_v22 = vmax.f32 %v906_v54, %v913_v19 }
 0x6bf   : > { %v909_v21 = vpop.f32.mrf.mxu0 }
 0x6c0   : > { %v914_v23 = vmul.f32 0.2, %v909_v21  ;;  %v923_v27 = vrot.slane %v915_v22, 1  ;;  %v917_v29 = vrot.slane %v915_v22, 7 }
 0x6c1   : > { %v2432_v24 = vpop.f32.mrf.mxu0 }
 0x6c2   : > { %v916_v26 = vmax.f32 %v909_v21, %v914_v23  ;;  %v2708_v24 = vld [vmem:[#allocation5 + $0x1f8] sm:$0xff]  }
 0x6c4   : > { %v924_v28 = vrot.slane %v916_v26, 1  ;;  %v918_v30 = vrot.slane %v916_v26, 7 }
 0x6c6   : > { %v919_v31 = vsel %vm237_vm3, %v917_v29, %v918_v30  ;;  %v920_v32 = vsel %vm237_vm3, %v918_v30, %v917_v29  ;;  %v926_v33 = vsel %vm244_vm4, %v924_v28, %v923_v27  ;;  %v925_v36 = vsel %vm244_vm4, %v923_v27, %v924_v28  ;;  %v2711_v27 = vld [vmem:[#allocation5 + $0x1e0] sm:$0xff]   ;;  %v2712_v28 = vld [vmem:[#allocation5 + $0x1d8] sm:$0xff]   ;;  %v2713_v29 = vld [vmem:[#allocation5 + $0x1d0] sm:$0xff]  }
 0x6c7   : > { %931 = vrot.lane.b32.xlu1 %v919_v31, %s2857_s14  ;;  %v921_v34 = vmul.f32 %v3000_v13, %v920_v32  ;;  %v928_v35 = vmul.f32 %v3003_v14, %v926_v33  ;;  %v2714_v33 = vld [vmem:[#allocation5 + $0x1c8] sm:$0xff]  }
 0x6c9   : > { %929 = vrot.lane.b32.xlu0 %v921_v34, %s2857_s14 }
 0x6cb   : > { %937 = vrot.lane.b32.xlu1 %v928_v35, %s2860_s16 }
 0x6cd   : > { %935 = vrot.lane.b32.xlu0 %v925_v36, %s2860_s16 }
 0x739   : > { %v932_v37 = vpop.permute.xlu1 %931 }
 0x73a   : > { %v934_v40 = vadd.f32 %v932_v37, %v916_v26  ;;  %v2710_v26 = vld [vmem:[#allocation5 + $0x1e8] sm:$0xff]  }
 0x73b   : > { %v930_v39 = vpop.permute.xlu0 %929 }
 0x73c   : > { %v933_v42 = vadd.f32 %v930_v39, %v915_v22  ;;  %v2715_v39 = vld [vmem:[#allocation5 + $0x1c0] sm:$0xff]  }
 0x73d   : > { %v938_v41 = vpop.permute.xlu1 %937 }
 0x73e   : > { %v940_v43 = vadd.f32 %v938_v41, %v934_v40 }
 0x73f   : > { %v936_v44 = vpop.permute.xlu0 %935 }
 0x740   : > { %v939_v46 = vadd.f32 %v936_v44, %v933_v42  ;;  %v942_v47 = vadd.f32 %v3032_v38, %v940_v43 }
 0x742   : > { %v941_v48 = vadd.f32 %v3032_v38, %v939_v46 }
 0x744   : > { %v943_v50 = vpack.c.bf16 %v942_v47, %v941_v48 }
 0x746   : > { %2450 = vmatmul.mubr.bf16.vlgmr.msra.gmra.mxu1 %v943_v50 }
 0x747   : > { %2489 = vmatprep.mubr.msk.bf16.mxu1 %vm2858_vm5, %v2856_v1  ;;  %2474 = vmatpush3.bf16.msra.mxu1 %v2708_v24 }
 0x748   : > { %2475 = vmatprep.subr.bf16.mxu1 %v2856_v1 }
 0x74b   : > { %2476 = vmatpush3.bf16.msra.mxu1 %v2709_v25 }
 0x74c   : > { %2477 = vmatprep.subr.bf16.mxu1 %v2856_v1 }
 0x74f   : > { %2478 = vmatpush3.bf16.msra.mxu1 %v2710_v26 }
 0x750   : > { %2479 = vmatprep.subr.bf16.mxu1 %v2856_v1 }
 0x753   : > { %2480 = vmatpush3.bf16.msra.mxu1 %v2711_v27 }
 0x754   : > { %2481 = vmatprep.subr.bf16.mxu1 %v2856_v1 }
 0x757   : > { %2482 = vmatpush3.bf16.msra.mxu1 %v2712_v28 }
 0x758   : > { %2483 = vmatprep.subr.bf16.mxu1 %v2856_v1 }
 0x75b   : > { %2484 = vmatpush3.bf16.msra.mxu1 %v2713_v29 }
 0x75c   : > { %2485 = vmatprep.subr.bf16.mxu1 %v2856_v1 }
 0x75f   : > { %2486 = vmatpush3.bf16.msra.mxu1 %v2714_v33 }
 0x760   : > { %2487 = vmatprep.subr.bf16.mxu1 %v2856_v1 }
 0x763   : > { %2488 = vmatpush3.bf16.msra.mxu1 %v2715_v39  ;;  %v2725_v39 = vld [vmem:[#allocation5 + $0x270] sm:$0xff]  }
 0x764   : > { %2513 = vmatprep.subr.bf16.mxu1 %v2856_v1 }
 0x806   : > { %v1043_v59 = vpop.f32.mrf.mxu1 }
 0x807   : > { %v3197_v62 = vadd.f32 %v1043_v59, %v3134_v45 }
 0x808   : > { %v2451_v61 = vpop.f32.mrf.mxu1 }
 0x809   : > { %v1056_v5 = vrot.slane %v3197_v62, 1  ;;  %v1050_v7 = vrot.slane %v3197_v62, 7 }
 0x80a   : > { %v1046_v63 = vpop.f32.mrf.mxu1 }
 0x80b   : > { %v3201_v3 = vadd.f32 %v1046_v63, %v3137_v49 }
 0x80c   : > { %v2452_v4 = vpop.f32.mrf.mxu1 }
 0x80d   : > { %v1057_v6 = vrot.slane %v3201_v3, 1  ;;  %v1051_v8 = vrot.slane %v3201_v3, 7 }
 0x80f   : > { %v1052_v45 = vsel %vm237_vm3, %v1050_v7, %v1051_v8  ;;  %v1053_v9 = vsel %vm237_vm3, %v1051_v8, %v1050_v7  ;;  %v1059_v49 = vsel %vm244_vm4, %v1057_v6, %v1056_v5  ;;  %v1058_v12 = vsel %vm244_vm4, %v1056_v5, %v1057_v6  ;;  %v2716_v6 = vld [vmem:[#allocation5 + $0x238] sm:$0xff]   ;;  %v2717_v7 = vld [vmem:[#allocation5 + $0x230] sm:$0xff]   ;;  %v2718_v8 = vld [vmem:[#allocation5 + $0x228] sm:$0xff]  }
 0x810   : > { %1064 = vrot.lane.b32.xlu1 %v1052_v45, %s2857_s14  ;;  %v1054_v10 = vmul.f32 %v3000_v13, %v1053_v9  ;;  %v1061_v11 = vmul.f32 %v3003_v14, %v1059_v49  ;;  %v2719_v45 = vld [vmem:[#allocation5 + $0x220] sm:$0xff]   ;;  %v2720_v9 = vld [vmem:[#allocation5 + $0x218] sm:$0xff]   ;;  %v2721_v49 = vld [vmem:[#allocation5 + $0x210] sm:$0xff]  }
 0x812   : > { %1062 = vrot.lane.b32.xlu0 %v1054_v10, %s2857_s14 }
 0x814   : > { %1070 = vrot.lane.b32.xlu1 %v1061_v11, %s2860_s16  ;;  %v2722_v11 = vld [vmem:[#allocation5 + $0x208] sm:$0xff]  }
 0x816   : > { %1068 = vrot.lane.b32.xlu0 %v1058_v12, %s2860_s16 }
 0x882   : > { %v1065_v15 = vpop.permute.xlu1 %1064 }
 0x883   : > { %v1067_v17 = vadd.f32 %v1065_v15, %v3201_v3 }
 0x884   : > { %v1063_v16 = vpop.permute.xlu0 %1062 }
 0x885   : > { %v1066_v54 = vadd.f32 %v1063_v16, %v3197_v62 }
 0x886   : > { %v1071_v18 = vpop.permute.xlu1 %1070 }
 0x887   : > { %v1073_v19 = vadd.f32 %v1071_v18, %v1067_v17  ;;  %v2723_v17 = vld [vmem:[#allocation5 + $0x200] sm:$0xff]  }
 0x888   : > { %v1069_v58 = vpop.permute.xlu0 %1068 }
 0x889   : > { %v1072_v20 = vadd.f32 %v1069_v58, %v1066_v54  ;;  %v1075_v21 = vadd.f32 %v3032_v38, %v1073_v19 }
 0x88b   : > { %v1074_v22 = vadd.f32 %v3032_v38, %v1072_v20 }
 0x88d   : > { %v1076_v23 = vpack.c.bf16 %v1075_v21, %v1074_v22 }
 0x88f   : > { %2470 = vmatmul.mubr.bf16.vlgmr.msra.gmra.mxu0 %v1076_v23 }
 0x890   : > { %2509 = vmatprep.mubr.msk.bf16.mxu0 %vm2858_vm5, %v2856_v1  ;;  %2494 = vmatpush3.bf16.msra.mxu0 %v2716_v6 }
 0x891   : > { %2495 = vmatprep.subr.bf16.mxu0 %v2856_v1 }
 0x894   : > { %2496 = vmatpush3.bf16.msra.mxu0 %v2717_v7 }
 0x895   : > { %2497 = vmatprep.subr.bf16.mxu0 %v2856_v1 }
 0x898   : > { %2498 = vmatpush3.bf16.msra.mxu0 %v2718_v8 }
 0x899   : > { %2499 = vmatprep.subr.bf16.mxu0 %v2856_v1 }
 0x89c   : > { %2500 = vmatpush3.bf16.msra.mxu0 %v2719_v45 }
 0x89d   : > { %2501 = vmatprep.subr.bf16.mxu0 %v2856_v1 }
 0x8a0   : > { %2502 = vmatpush3.bf16.msra.mxu0 %v2720_v9 }
 0x8a1   : > { %2503 = vmatprep.subr.bf16.mxu0 %v2856_v1 }
 0x8a4   : > { %2504 = vmatpush3.bf16.msra.mxu0 %v2721_v49 }
 0x8a5   : > { %2505 = vmatprep.subr.bf16.mxu0 %v2856_v1 }
 0x8a8   : > { %2506 = vmatpush3.bf16.msra.mxu0 %v2722_v11 }
 0x8a9   : > { %2507 = vmatprep.subr.bf16.mxu0 %v2856_v1 }
 0x8ac   : > { %2508 = vmatpush3.bf16.msra.mxu0 %v2723_v17 }
 0x8ad   : > { %2533 = vmatprep.subr.bf16.mxu0 %v2856_v1 }
 0x94f   : > { %v1176_v30 = vpop.f32.mrf.mxu0 }
 0x950   : > { %v1183_v31 = vmul.f32 0.2, %v1176_v30 }
 0x951   : > { %v2471_v32 = vpop.f32.mrf.mxu0 }
 0x952   : > { %v1185_v35 = vmax.f32 %v1176_v30, %v1183_v31 }
 0x953   : > { %v1179_v34 = vpop.f32.mrf.mxu0 }
 0x954   : > { %v1184_v36 = vmul.f32 0.2, %v1179_v34  ;;  %v1193_v41 = vrot.slane %v1185_v35, 1  ;;  %v1187_v43 = vrot.slane %v1185_v35, 7 }
 0x955   : > { %v2472_v37 = vpop.f32.mrf.mxu0 }
 0x956   : > { %v1186_v40 = vmax.f32 %v1179_v34, %v1184_v36  ;;  %v2724_v37 = vld [vmem:[#allocation5 + $0x278] sm:$0xff]  }
 0x958   : > { %v1194_v42 = vrot.slane %v1186_v40, 1  ;;  %v1188_v44 = vrot.slane %v1186_v40, 7 }
 0x95a   : > { %v1189_v46 = vsel %vm237_vm3, %v1187_v43, %v1188_v44  ;;  %v1190_v47 = vsel %vm237_vm3, %v1188_v44, %v1187_v43  ;;  %v1196_v48 = vsel %vm244_vm4, %v1194_v42, %v1193_v41  ;;  %v1195_v52 = vsel %vm244_vm4, %v1193_v41, %v1194_v42  ;;  %v2727_v41 = vld [vmem:[#allocation5 + $0x260] sm:$0xff]   ;;  %v2728_v42 = vld [vmem:[#allocation5 + $0x258] sm:$0xff]   ;;  %v2729_v43 = vld [vmem:[#allocation5 + $0x250] sm:$0xff]  }
 0x95b   : > { %1201 = vrot.lane.b32.xlu1 %v1189_v46, %s2857_s14  ;;  %v1191_v50 = vmul.f32 %v3000_v13, %v1190_v47  ;;  %v1198_v51 = vmul.f32 %v3003_v14, %v1196_v48  ;;  %v2730_v48 = vld [vmem:[#allocation5 + $0x248] sm:$0xff]  }
 0x95d   : > { %1199 = vrot.lane.b32.xlu0 %v1191_v50, %s2857_s14 }
 0x95f   : > { %1207 = vrot.lane.b32.xlu1 %v1198_v51, %s2860_s16 }
 0x961   : > { %1205 = vrot.lane.b32.xlu0 %v1195_v52, %s2860_s16 }
 0x9cd   : > { %v1202_v53 = vpop.permute.xlu1 %1201 }
 0x9ce   : > { %v1204_v56 = vadd.f32 %v1202_v53, %v1186_v40  ;;  %v2726_v40 = vld [vmem:[#allocation5 + $0x268] sm:$0xff]  }
 0x9cf   : > { %v1200_v55 = vpop.permute.xlu0 %1199 }
 0x9d0   : > { %v1203_v59 = vadd.f32 %v1200_v55, %v1185_v35  ;;  %v2731_v55 = vld [vmem:[#allocation5 + $0x240] sm:$0xff]  }
 0x9d1   : > { %v1208_v57 = vpop.permute.xlu1 %1207 }
 0x9d2   : > { %v1210_v60 = vadd.f32 %v1208_v57, %v1204_v56 }
 0x9d3   : > { %v1206_v61 = vpop.permute.xlu0 %1205 }
 0x9d4   : > { %v1209_v63 = vadd.f32 %v1206_v61, %v1203_v59  ;;  %v1212_v0 = vadd.f32 %v3032_v38, %v1210_v60 }
 0x9d6   : > { %v1211_v4 = vadd.f32 %v3032_v38, %v1209_v63 }
 0x9d8   : > { %v1213_v5 = vpack.c.bf16 %v1212_v0, %v1211_v4 }
 0x9da   : > { %2490 = vmatmul.mubr.bf16.vlgmr.msra.gmra.mxu1 %v1213_v5 }
 0x9db   : > { %2529 = vmatprep.mubr.msk.bf16.mxu1 %vm2858_vm5, %v2856_v1  ;;  %2514 = vmatpush3.bf16.msra.mxu1 %v2724_v37 }
 0x9dc   : > { %2515 = vmatprep.subr.bf16.mxu1 %v2856_v1 }
 0x9df   : > { %2516 = vmatpush3.bf16.msra.mxu1 %v2725_v39 }
 0x9e0   : > { %2517 = vmatprep.subr.bf16.mxu1 %v2856_v1 }
 0x9e3   : > { %2518 = vmatpush3.bf16.msra.mxu1 %v2726_v40 }
 0x9e4   : > { %2519 = vmatprep.subr.bf16.mxu1 %v2856_v1 }
 0x9e7   : > { %2520 = vmatpush3.bf16.msra.mxu1 %v2727_v41 }
 0x9e8   : > { %2521 = vmatprep.subr.bf16.mxu1 %v2856_v1 }
 0x9eb   : > { %2522 = vmatpush3.bf16.msra.mxu1 %v2728_v42 }
 0x9ec   : > { %2523 = vmatprep.subr.bf16.mxu1 %v2856_v1 }
 0x9ef   : > { %2524 = vmatpush3.bf16.msra.mxu1 %v2729_v43 }
 0x9f0   : > { %2525 = vmatprep.subr.bf16.mxu1 %v2856_v1 }
 0x9f3   : > { %2526 = vmatpush3.bf16.msra.mxu1 %v2730_v48 }
 0x9f4   : > { %2527 = vmatprep.subr.bf16.mxu1 %v2856_v1 }
 0x9f7   : > { %2528 = vmatpush3.bf16.msra.mxu1 %v2731_v55  ;;  %v2741_v55 = vld [vmem:[#allocation5 + $0x2f0] sm:$0xff]  }
 0x9f8   : > { %2553 = vmatprep.subr.bf16.mxu1 %v2856_v1 }
 0xa9a   : > { %v1313_v10 = vpop.f32.mrf.mxu1 }
 0xa9b   : > { %v3261_v15 = vadd.f32 %v1313_v10, %v3197_v62 }
 0xa9c   : > { %v2491_v12 = vpop.f32.mrf.mxu1 }
 0xa9d   : > { %v1326_v19 = vrot.slane %v3261_v15, 1  ;;  %v1320_v20 = vrot.slane %v3261_v15, 7 }
 0xa9e   : > { %v1316_v16 = vpop.f32.mrf.mxu1 }
 0xa9f   : > { %v3265_v18 = vadd.f32 %v1316_v16, %v3201_v3 }
 0xaa0   : > { %v2492_v54 = vpop.f32.mrf.mxu1 }
 0xaa1   : > { %v1327_v58 = vrot.slane %v3265_v18, 1  ;;  %v1321_v21 = vrot.slane %v3265_v18, 7 }
 0xaa3   : > { %v1322_v62 = vsel %vm237_vm3, %v1320_v20, %v1321_v21  ;;  %v1323_v22 = vsel %vm237_vm3, %v1321_v21, %v1320_v20  ;;  %v1329_v3 = vsel %vm244_vm4, %v1327_v58, %v1326_v19  ;;  %v1328_v25 = vsel %vm244_vm4, %v1326_v19, %v1327_v58  ;;  %v2732_v58 = vld [vmem:[#allocation5 + $0x2b8] sm:$0xff]   ;;  %v2733_v20 = vld [vmem:[#allocation5 + $0x2b0] sm:$0xff]   ;;  %v2734_v21 = vld [vmem:[#allocation5 + $0x2a8] sm:$0xff]  }
 0xaa4   : > { %1334 = vrot.lane.b32.xlu1 %v1322_v62, %s2857_s14  ;;  %v1324_v23 = vmul.f32 %v3000_v13, %v1323_v22  ;;  %v1331_v24 = vmul.f32 %v3003_v14, %v1329_v3  ;;  %v2735_v62 = vld [vmem:[#allocation5 + $0x2a0] sm:$0xff]   ;;  %v2736_v22 = vld [vmem:[#allocation5 + $0x298] sm:$0xff]   ;;  %v2737_v3 = vld [vmem:[#allocation5 + $0x290] sm:$0xff]  }
 0xaa6   : > { %1332 = vrot.lane.b32.xlu0 %v1324_v23, %s2857_s14 }
 0xaa8   : > { %1340 = vrot.lane.b32.xlu1 %v1331_v24, %s2860_s16  ;;  %v2738_v24 = vld [vmem:[#allocation5 + $0x288] sm:$0xff]  }
 0xaaa   : > { %1338 = vrot.lane.b32.xlu0 %v1328_v25, %s2860_s16 }
 0xb16   : > { %v1335_v26 = vpop.permute.xlu1 %1334 }
 0xb17   : > { %v1337_v28 = vadd.f32 %v1335_v26, %v3265_v18 }
 0xb18   : > { %v1333_v27 = vpop.permute.xlu0 %1332 }
 0xb19   : > { %v1336_v30 = vadd.f32 %v1333_v27, %v3261_v15 }
 0xb1a   : > { %v1341_v29 = vpop.permute.xlu1 %1340 }
 0xb1b   : > { %v1343_v31 = vadd.f32 %v1341_v29, %v1337_v28  ;;  %v2739_v28 = vld [vmem:[#allocation5 + $0x280] sm:$0xff]  }
 0xb1c   : > { %v1339_v32 = vpop.permute.xlu0 %1338 }
 0xb1d   : > { %v1342_v33 = vadd.f32 %v1339_v32, %v1336_v30  ;;  %v1345_v34 = vadd.f32 %v3032_v38, %v1343_v31 }
 0xb1f   : > { %v1344_v35 = vadd.f32 %v3032_v38, %v1342_v33 }
 0xb21   : > { %v1346_v36 = vpack.c.bf16 %v1345_v34, %v1344_v35 }
 0xb23   : > { %2510 = vmatmul.mubr.bf16.vlgmr.msra.gmra.mxu0 %v1346_v36 }
 0xb24   : > { %2549 = vmatprep.mubr.msk.bf16.mxu0 %vm2858_vm5, %v2856_v1  ;;  %2534 = vmatpush3.bf16.msra.mxu0 %v2732_v58 }
 0xb25   : > { %2535 = vmatprep.subr.bf16.mxu0 %v2856_v1 }
 0xb28   : > { %2536 = vmatpush3.bf16.msra.mxu0 %v2733_v20 }
 0xb29   : > { %2537 = vmatprep.subr.bf16.mxu0 %v2856_v1 }
 0xb2c   : > { %2538 = vmatpush3.bf16.msra.mxu0 %v2734_v21 }
 0xb2d   : > { %2539 = vmatprep.subr.bf16.mxu0 %v2856_v1 }
 0xb30   : > { %2540 = vmatpush3.bf16.msra.mxu0 %v2735_v62 }
 0xb31   : > { %2541 = vmatprep.subr.bf16.mxu0 %v2856_v1 }
 0xb34   : > { %2542 = vmatpush3.bf16.msra.mxu0 %v2736_v22 }
 0xb35   : > { %2543 = vmatprep.subr.bf16.mxu0 %v2856_v1 }
 0xb38   : > { %2544 = vmatpush3.bf16.msra.mxu0 %v2737_v3 }
 0xb39   : > { %2545 = vmatprep.subr.bf16.mxu0 %v2856_v1 }
 0xb3c   : > { %2546 = vmatpush3.bf16.msra.mxu0 %v2738_v24 }
 0xb3d   : > { %2547 = vmatprep.subr.bf16.mxu0 %v2856_v1 }
 0xb40   : > { %2548 = vmatpush3.bf16.msra.mxu0 %v2739_v28 }
 0xb41   : > { %2573 = vmatprep.subr.bf16.mxu0 %v2856_v1 }
 0xbe3   : > { %v1446_v44 = vpop.f32.mrf.mxu0 }
 0xbe4   : > { %v1453_v46 = vmul.f32 0.2, %v1446_v44 }
 0xbe5   : > { %v2511_v47 = vpop.f32.mrf.mxu0 }
 0xbe6   : > { %v1455_v51 = vmax.f32 %v1446_v44, %v1453_v46 }
 0xbe7   : > { %v1449_v50 = vpop.f32.mrf.mxu0 }
 0xbe8   : > { %v1454_v52 = vmul.f32 0.2, %v1449_v50  ;;  %v1463_v57 = vrot.slane %v1455_v51, 1  ;;  %v1457_v60 = vrot.slane %v1455_v51, 7 }
 0xbe9   : > { %v2512_v53 = vpop.f32.mrf.mxu0 }
 0xbea   : > { %v1456_v56 = vmax.f32 %v1449_v50, %v1454_v52  ;;  %v2740_v53 = vld [vmem:[#allocation5 + $0x2f8] sm:$0xff]  }
 0xbec   : > { %v1464_v59 = vrot.slane %v1456_v56, 1  ;;  %v1458_v61 = vrot.slane %v1456_v56, 7 }
 0xbee   : > { %v1459_v63 = vsel %vm237_vm3, %v1457_v60, %v1458_v61  ;;  %v1460_v0 = vsel %vm237_vm3, %v1458_v61, %v1457_v60  ;;  %v1466_v4 = vsel %vm244_vm4, %v1464_v59, %v1463_v57  ;;  %v1465_v7 = vsel %vm244_vm4, %v1463_v57, %v1464_v59  ;;  %v2743_v57 = vld [vmem:[#allocation5 + $0x2e0] sm:$0xff]   ;;  %v2744_v59 = vld [vmem:[#allocation5 + $0x2d8] sm:$0xff]   ;;  %v2745_v60 = vld [vmem:[#allocation5 + $0x2d0] sm:$0xff]  }
 0xbef   : > { %1471 = vrot.lane.b32.xlu1 %v1459_v63, %s2857_s14  ;;  %v1461_v5 = vmul.f32 %v3000_v13, %v1460_v0  ;;  %v1468_v6 = vmul.f32 %v3003_v14, %v1466_v4  ;;  %v2746_v4 = vld [vmem:[#allocation5 + $0x2c8] sm:$0xff]  }
 0xbf1   : > { %1469 = vrot.lane.b32.xlu0 %v1461_v5, %s2857_s14 }
 0xbf3   : > { %1477 = vrot.lane.b32.xlu1 %v1468_v6, %s2860_s16 }
 0xbf5   : > { %1475 = vrot.lane.b32.xlu0 %v1465_v7, %s2860_s16 }
 0xc61   : > { %v1472_v8 = vpop.permute.xlu1 %1471 }
 0xc62   : > { %v1474_v9 = vadd.f32 %v1472_v8, %v1456_v56  ;;  %v2742_v56 = vld [vmem:[#allocation5 + $0x2e8] sm:$0xff]  }
 0xc63   : > { %v1470_v45 = vpop.permute.xlu0 %1469 }
 0xc64   : > { %v1473_v10 = vadd.f32 %v1470_v45, %v1455_v51  ;;  %v2747_v45 = vld [vmem:[#allocation5 + $0x2c0] sm:$0xff]  }
 0xc65   : > { %v1478_v49 = vpop.permute.xlu1 %1477 }
 0xc66   : > { %v1480_v11 = vadd.f32 %v1478_v49, %v1474_v9 }
 0xc67   : > { %v1476_v12 = vpop.permute.xlu0 %1475 }
 0xc68   : > { %v1479_v16 = vadd.f32 %v1476_v12, %v1473_v10  ;;  %v1482_v17 = vadd.f32 %v3032_v38, %v1480_v11 }
 0xc6a   : > { %v1481_v54 = vadd.f32 %v3032_v38, %v1479_v16 }
 0xc6c   : > { %v1483_v19 = vpack.c.bf16 %v1482_v17, %v1481_v54 }
 0xc6e   : > { %2530 = vmatmul.mubr.bf16.vlgmr.msra.gmra.mxu1 %v1483_v19 }
 0xc6f   : > { %2569 = vmatprep.mubr.msk.bf16.mxu1 %vm2858_vm5, %v2856_v1  ;;  %2554 = vmatpush3.bf16.msra.mxu1 %v2740_v53 }
 0xc70   : > { %2555 = vmatprep.subr.bf16.mxu1 %v2856_v1 }
 0xc73   : > { %2556 = vmatpush3.bf16.msra.mxu1 %v2741_v55 }
 0xc74   : > { %2557 = vmatprep.subr.bf16.mxu1 %v2856_v1 }
 0xc77   : > { %2558 = vmatpush3.bf16.msra.mxu1 %v2742_v56 }
 0xc78   : > { %2559 = vmatprep.subr.bf16.mxu1 %v2856_v1 }
 0xc7b   : > { %2560 = vmatpush3.bf16.msra.mxu1 %v2743_v57 }
 0xc7c   : > { %2561 = vmatprep.subr.bf16.mxu1 %v2856_v1 }
 0xc7f   : > { %2562 = vmatpush3.bf16.msra.mxu1 %v2744_v59 }
 0xc80   : > { %2563 = vmatprep.subr.bf16.mxu1 %v2856_v1 }
 0xc83   : > { %2564 = vmatpush3.bf16.msra.mxu1 %v2745_v60 }
 0xc84   : > { %2565 = vmatprep.subr.bf16.mxu1 %v2856_v1 }
 0xc87   : > { %2566 = vmatpush3.bf16.msra.mxu1 %v2746_v4 }
 0xc88   : > { %2567 = vmatprep.subr.bf16.mxu1 %v2856_v1 }
 0xc8b   : > { %2568 = vmatpush3.bf16.msra.mxu1 %v2747_v45 }
 0xd2e   : > { %v1583_v23 = vpop.f32.mrf.mxu1 }
 0xd2f   : > { %v1584_v26 = vadd.f32 %v1583_v23, %v3261_v15 }
 0xd30   : > { %v2531_v25 = vpop.f32.mrf.mxu1 }
 0xd31   : > { %v1590_v31 = vrot.slane %v1584_v26, 7  ;;  %v1596_v32 = vrot.slane %v1584_v26, 1 }
 0xd32   : > { %v1586_v27 = vpop.f32.mrf.mxu1 }
 0xd33   : > { %v1587_v29 = vadd.f32 %v1586_v27, %v3265_v18 }
 0xd34   : > { %v2532_v30 = vpop.f32.mrf.mxu1 }
 0xd35   : > { %v1591_v33 = vrot.slane %v1587_v29, 7  ;;  %v1597_v34 = vrot.slane %v1587_v29, 1  ;;  %v2748_v30 = vld [vmem:[#allocation5 + $0x338] sm:$0xff]  }
 0xd37   : > { %v1592_v35 = vsel %vm237_vm3, %v1590_v31, %v1591_v33  ;;  %v1593_v15 = vsel %vm237_vm3, %v1591_v33, %v1590_v31  ;;  %v1599_v36 = vsel %vm244_vm4, %v1597_v34, %v1596_v32  ;;  %v1598_v39 = vsel %vm244_vm4, %v1596_v32, %v1597_v34  ;;  %v2749_v31 = vld [vmem:[#allocation5 + $0x330] sm:$0xff]   ;;  %v2750_v32 = vld [vmem:[#allocation5 + $0x328] sm:$0xff]   ;;  %v2751_v33 = vld [vmem:[#allocation5 + $0x320] sm:$0xff]  }
 0xd38   : > { %1604 = vrot.lane.b32.xlu1 %v1592_v35, %s2857_s14  ;;  %v1594_v18 = vmul.f32 %v3000_v13, %v1593_v15  ;;  %v1601_v37 = vmul.f32 %v3003_v14, %v1599_v36  ;;  %v2752_v34 = vld [vmem:[#allocation5 + $0x318] sm:$0xff]   ;;  %v2753_v35 = vld [vmem:[#allocation5 + $0x310] sm:$0xff]  }
 0xd3a   : > { %1602 = vrot.lane.b32.xlu0 %v1594_v18, %s2857_s14 }
 0xd3c   : > { %1610 = vrot.lane.b32.xlu1 %v1601_v37, %s2860_s16  ;;  %v2754_v37 = vld [vmem:[#allocation5 + $0x308] sm:$0xff]  }
 0xd3e   : > { %1608 = vrot.lane.b32.xlu0 %v1598_v39, %s2860_s16 }
 0xdaa   : > { %v1605_v40 = vpop.permute.xlu1 %1604 }
 0xdab   : > { %v1607_v42 = vadd.f32 %v1605_v40, %v1587_v29 }
 0xdac   : > { %v1603_v41 = vpop.permute.xlu0 %1602 }
 0xdad   : > { %v1606_v44 = vadd.f32 %v1603_v41, %v1584_v26 }
 0xdae   : > { %v1611_v43 = vpop.permute.xlu1 %1610 }
 0xdaf   : > { %v1613_v46 = vadd.f32 %v1611_v43, %v1607_v42  ;;  %v2755_v43 = vld [vmem:[#allocation5 + $0x300] sm:$0xff]  }
 0xdb0   : > { %v1609_v47 = vpop.permute.xlu0 %1608 }
 0xdb1   : > { %v1612_v48 = vadd.f32 %v1609_v47, %v1606_v44  ;;  %v1615_v50 = vadd.f32 %v3032_v38, %v1613_v46 }
 0xdb3   : > { %v1614_v51 = vadd.f32 %v3032_v38, %v1612_v48 }
 0xdb5   : > { %v1616_v52 = vpack.c.bf16 %v1615_v50, %v1614_v51 }
 0xdb7   : > { %2550 = vmatmul.mubr.bf16.vlgmr.msra.gmra.mxu0 %v1616_v52 }
 0xdb8   : > { %2589 = vmatprep.mubr.msk.bf16.mxu0 %vm2858_vm5, %v2856_v1  ;;  %2574 = vmatpush3.bf16.msra.mxu0 %v2748_v30 }
 0xdb9   : > { %2575 = vmatprep.subr.bf16.mxu0 %v2856_v1 }
 0xdbc   : > { %2576 = vmatpush3.bf16.msra.mxu0 %v2749_v31 }
 0xdbd   : > { %2577 = vmatprep.subr.bf16.mxu0 %v2856_v1 }
 0xdc0   : > { %2578 = vmatpush3.bf16.msra.mxu0 %v2750_v32 }
 0xdc1   : > { %2579 = vmatprep.subr.bf16.mxu0 %v2856_v1 }
 0xdc4   : > { %2580 = vmatpush3.bf16.msra.mxu0 %v2751_v33 }
 0xdc5   : > { %2581 = vmatprep.subr.bf16.mxu0 %v2856_v1 }
 0xdc8   : > { %2582 = vmatpush3.bf16.msra.mxu0 %v2752_v34 }
 0xdc9   : > { %2583 = vmatprep.subr.bf16.mxu0 %v2856_v1 }
 0xdcc   : > { %2584 = vmatpush3.bf16.msra.mxu0 %v2753_v35 }
 0xdcd   : > { %2585 = vmatprep.subr.bf16.mxu0 %v2856_v1 }
 0xdd0   : > { %2586 = vmatpush3.bf16.msra.mxu0 %v2754_v37 }
 0xdd1   : > { %2587 = vmatprep.subr.bf16.mxu0 %v2856_v1 }
 0xdd4   : > { %2588 = vmatpush3.bf16.msra.mxu0 %v2755_v43 }
 0xe77   : > { %v1716_v61 = vpop.f32.mrf.mxu0 }
 0xe78   : > { %v1723_v63 = vmul.f32 0.2, %v1716_v61 }
 0xe79   : > { %v2551_v0 = vpop.f32.mrf.mxu0 }
 0xe7a   : > { %v1725_v6 = vmax.f32 %v1716_v61, %v1723_v63 }
 0xe7b   : > { %v1719_v5 = vpop.f32.mrf.mxu0 }
 0xe7c   : > { %v1724_v7 = vmul.f32 0.2, %v1719_v5  ;;  %v1733_v49 = vrot.slane %v1725_v6, 1  ;;  %v1727_v11 = vrot.slane %v1725_v6, 7 }
 0xe7d   : > { %v2552_v8 = vpop.f32.mrf.mxu0 }
 0xe7e   : > { %v1726_v9 = vmax.f32 %v1719_v5, %v1724_v7 }
 0xe80   : > { %v1734_v10 = vrot.slane %v1726_v9, 1  ;;  %v1728_v12 = vrot.slane %v1726_v9, 7 }
 0xe82   : > { %v1729_v16 = vsel %vm237_vm3, %v1727_v11, %v1728_v12  ;;  %v1730_v17 = vsel %vm237_vm3, %v1728_v12, %v1727_v11  ;;  %v1736_v54 = vsel %vm244_vm4, %v1734_v10, %v1733_v49  ;;  %v1735_v20 = vsel %vm244_vm4, %v1733_v49, %v1734_v10 }
 0xe83   : > { %1741 = vrot.lane.b32.xlu1 %v1729_v16, %s2857_s14  ;;  %v1731_v19 = vmul.f32 %v3000_v13, %v1730_v17  ;;  %v1738_v58 = vmul.f32 %v3003_v14, %v1736_v54 }
 0xe85   : > { %1739 = vrot.lane.b32.xlu0 %v1731_v19, %s2857_s14 }
 0xe87   : > { %1747 = vrot.lane.b32.xlu1 %v1738_v58, %s2860_s16 }
 0xe89   : > { %1745 = vrot.lane.b32.xlu0 %v1735_v20, %s2860_s16 }
 0xef5   : > { %v1742_v21 = vpop.permute.xlu1 %1741 }
 0xef6   : > { %v1744_v22 = vadd.f32 %v1742_v21, %v1726_v9 }
 0xef7   : > { %v1740_v62 = vpop.permute.xlu0 %1739 }
 0xef8   : > { %v1743_v23 = vadd.f32 %v1740_v62, %v1725_v6 }
 0xef9   : > { %v1748_v3 = vpop.permute.xlu1 %1747 }
 0xefa   : > { %v1750_v24 = vadd.f32 %v1748_v3, %v1744_v22 }
 0xefb   : > { %v1746_v25 = vpop.permute.xlu0 %1745 }
 0xefc   : > { %v1749_v26 = vadd.f32 %v1746_v25, %v1743_v23  ;;  %v1752_v27 = vadd.f32 %v3032_v38, %v1750_v24 }
 0xefe   : > { %v1751_v28 = vadd.f32 %v3032_v38, %v1749_v26 }
 0xf00   : > { %v1753_v29 = vpack.c.bf16 %v1752_v27, %v1751_v28 }
 0xf02   : > { %2570 = vmatmul.mubr.bf16.vlgmr.msra.gmra.mxu1 %v1753_v29 }
 0xfc2   : > { %v1853_v15 = vpop.f32.mrf.mxu1 }
 0xfc3   : > { %v1860_v36 = vmul.f32 0.2, %v1853_v15 }
 0xfc4   : > { %v2571_v18 = vpop.f32.mrf.mxu1 }
 0xfc5   : > { %v1862_v40 = vmax.f32 %v1853_v15, %v1860_v36 }
 0xfc6   : > { %v1856_v39 = vpop.f32.mrf.mxu1 }
 0xfc7   : > { %v1861_v41 = vmul.f32 0.2, %v1856_v39  ;;  %v1870_v46 = vrot.slane %v1862_v40, 1  ;;  %v1864_v48 = vrot.slane %v1862_v40, 7 }
 0xfc8   : > { %v2572_v42 = vpop.f32.mrf.mxu1 }
 0xfc9   : > { %v1863_v44 = vmax.f32 %v1856_v39, %v1861_v41 }
 0xfcb   : > { %v1871_v47 = vrot.slane %v1863_v44, 1  ;;  %v1865_v50 = vrot.slane %v1863_v44, 7 }
 0xfcd   : > { %v1866_v51 = vsel %vm237_vm3, %v1864_v48, %v1865_v50  ;;  %v1867_v52 = vsel %vm237_vm3, %v1865_v50, %v1864_v48  ;;  %v1873_v53 = vsel %vm244_vm4, %v1871_v47, %v1870_v46  ;;  %v1872_v56 = vsel %vm244_vm4, %v1870_v46, %v1871_v47 }
 0xfce   : > { %1878 = vrot.lane.b32.xlu1 %v1866_v51, %s2859_s15  ;;  %v1868_v1 = vmul.f32 %v3000_v13, %v1867_v52  ;;  %v1875_v55 = vmul.f32 %v3003_v14, %v1873_v53 }
 0xfd0   : > { %1876 = vrot.lane.b32.xlu0 %v1868_v1, %s2859_s15 }
 0xfd2   : > { %1884 = vrot.lane.b32.xlu1 %v1875_v55, %s2857_s14 }
 0xfd4   : > { %1882 = vrot.lane.b32.xlu0 %v1872_v56, %s2857_s14 }
0x1040   : > { %v1879_v57 = vpop.permute.xlu1 %1878 }
0x1041   : > { %v1881_v60 = vadd.f32 %v1879_v57, %v1863_v44 }
0x1042   : > { %v1877_v59 = vpop.permute.xlu0 %1876 }
0x1043   : > { %v1880_v63 = vadd.f32 %v1877_v59, %v1862_v40 }
0x1044   : > { %v1885_v61 = vpop.permute.xlu1 %1884 }
0x1045   : > { %v1887_v0 = vadd.f32 %v1885_v61, %v1881_v60 }
0x1046   : > { %v1883_v4 = vpop.permute.xlu0 %1882 }
0x1047   : > { %v1886_v13 = vadd.f32 %v1883_v4, %v1880_v63  ;;  %v1889_v5 = vadd.f32 %v3032_v38, %v1887_v0 }
0x1049   : > { %v1888_v14 = vadd.f32 %v3032_v38, %v1886_v13 }
0x104b   : > { %v1890_v6 = vpack.c.bf16 %v1889_v5, %v1888_v14 }
0x104d   : > { %2590 = vmatmul.mubr.bf16.vlgmr.msra.gmra.mxu0 %v1890_v6 }
0x110d   : > { %v1990_v2 = vpop.f32.mrf.mxu0 }
0x110f   : > { %v2591_v7 = vpop.f32.mrf.mxu0 }
0x1111   : > { %v1993_v8 = vpop.f32.mrf.mxu0 }
0x1112   : > { %v2214_v45 = vpack.c.bf16 %v1993_v8, %v1990_v2 }
0x1113   : > { %v2592_v9 = vpop.f32.mrf.mxu0 }
0x1114   : > { %2215 = vst [vmem:[%s179_s19] sm:$0xff] %v2214_v45  }
0x1115 PF: > { %p13_p7 = scmp.ge.s32.totalorder %s2923_s20, 4   ;;  %s3425_s9 = smov %s2840_s10 }
0x1116   : > { %s3426_s10 = smov %s2844_s11  ;;  %s3427_s11 = smov %s2940_s28 }
0x1117   : > { %s3428_s12 = smov %s2923_s20  ;;  %15 = sbr.rel (!%p13_p7) target bundleno = 4 (0x4), region = 84 }
0x111c   :  { %2029 = vsyncpa [#allocation4], 1 }
0x111d   :  { %2031 = vsyncpa [#allocation4 + $0x1], 1 }
0x111e   :  { %2032 = vsyncpa [#allocation6], 1 }

</bundles_post_ra>
